<compile_context>
chip_gen: v7x
topology: tpu7x:2x2x1
jax: 0.10.0
libtpu: 0.0.40
codegen_flags: <defaults>
</compile_context>

<pallas_src>
import functools

import numpy as np
import jax
import jax.numpy as jnp
from jax.experimental import pallas as pl
from jax.experimental.pallas import tpu as pltpu

# ----------------------------- config (small synthetic shapes) -----------------------------
B, S, H = 2, 8, 32          # batch, seq, hidden
N_HEADS, HEAD_DIM = 4, 8    # H = N_HEADS * HEAD_DIM
INTER = 64                  # MLP intermediate size
VOCAB = 128                 # lm_head output (lane-dense: 128)
N_LAYERS = 2                # "second half" of the decoder stack
EPS = 1e-5
ROPE_THETA = 10000.0


# ----------------------------- fused kernel (single invocation) -----------------------------
def _fused_part2_kernel(x_ref, cos_ref, sin_lo_ref, sin_hi_ref, bias_ref,
                        ln1_ref, wqkv_ref, wo_ref,
                        ln2_ref, wgu_ref, wd_ref,
                        fln_ref, wlm_ref,
                        o_ref,
                        *, n_heads, head_dim, inter, n_layers, eps):
    h_dim = x_ref.shape[1]
    half = head_dim // 2

    # Layer-invariant operands, loaded once (hoisted out of the layer loop).
    cos3 = cos_ref[...]          # (M, 3H)  cos on q|k sections, 1 on v section
    sin_lo3 = sin_lo_ref[...]    # (M, 3H)  -sin on first half of each q|k head, 0 elsewhere
    sin_hi3 = sin_hi_ref[...]    # (M, 3H)  +sin on second half of each q|k head, 0 elsewhere
    bias = bias_ref[...]         # (M, M)   additive block-diagonal causal mask (0 / -1e30)

    h = x_ref[...]               # (M, H) f32 residual stream, carried in vregs across layers

    def rms(t, w):
        var = jnp.mean(t * t, axis=-1, keepdims=True)
        return t * jax.lax.rsqrt(var + eps) * w

    def split_heads(t):          # (M, n_heads*head_dim) -> (n_heads, M, head_dim)
        return jnp.stack(
            [t[:, i * head_dim:(i + 1) * head_dim] for i in range(n_heads)], axis=0)

    # Statically unrolled layer loop (no grid steps, no scratch round-trips).
    for l in range(n_layers):
        # ---- RMSNorm 1 + fused QKV projection (bf16 MXU inputs, f32 accumulation) ----
        xn = rms(h, ln1_ref[l]).astype(jnp.bfloat16)
        qkv = jnp.dot(xn, wqkv_ref[l], preferred_element_type=jnp.float32)   # (M, 3H)

        # ---- RoPE on the fused q|k sections (identity on v): rotate-half via two full-width
        # static rolls; sign-masked sin tables zero out any cross-head/section wraparound.
        qkv = (qkv * cos3
               + jnp.roll(qkv, -half, axis=-1) * sin_lo3
               + jnp.roll(qkv, half, axis=-1) * sin_hi3)
        qkv_b = qkv.astype(jnp.bfloat16)

        qh = split_heads(qkv_b[:, 0:h_dim])                # (n_heads, M, D)
        kh = split_heads(qkv_b[:, h_dim:2 * h_dim])
        vh = split_heads(qkv_b[:, 2 * h_dim:3 * h_dim])

        # ---- head-batched causal attention (1/sqrt(D) already folded into Wq) ----
        s = jnp.einsum('hqd,hkd->hqk', qh, kh, preferred_element_type=jnp.float32)
        s = s + bias[None, :, :]                           # precomputed additive mask
        mx = jnp.max(s, axis=-1, keepdims=True)
        p = jnp.exp(s - mx)
        denom = jnp.sum(p, axis=-1, keepdims=True)
        p = p * pl.reciprocal(denom, approx=True)          # EUP reciprocal
        o_heads = jnp.einsum('hqk,hkd->hqd', p.astype(jnp.bfloat16), vh,
                             preferred_element_type=jnp.float32)   # (n_heads, M, D)
        attn = jnp.concatenate([o_heads[i] for i in range(n_heads)], axis=-1)  # (M, H)

        # ---- output projection + residual ----
        h = h + jnp.dot(attn.astype(jnp.bfloat16), wo_ref[l],
                        preferred_element_type=jnp.float32)

        # ---- RMSNorm 2 + fused gate/up SwiGLU + down projection + residual ----
        hn = rms(h, ln2_ref[l]).astype(jnp.bfloat16)
        gu = jnp.dot(hn, wgu_ref[l], preferred_element_type=jnp.float32)      # (M, 2*inter)
        g = gu[:, 0:inter]
        u = gu[:, inter:2 * inter]
        act = g * jax.nn.sigmoid(g) * u                    # SiLU(g) * u in f32
        h = h + jnp.dot(act.astype(jnp.bfloat16), wd_ref[l],
                        preferred_element_type=jnp.float32)

    # ---- final RMSNorm + lm_head, single lane-dense (VOCAB=128) store ----
    hn = rms(h, fln_ref[...]).astype(jnp.bfloat16)
    o_ref[...] = jnp.dot(hn, wlm_ref[...],
                         preferred_element_type=jnp.float32).astype(o_ref.dtype)


# ----------------------------- wrapper -----------------------------
def run_model_part2(x, fused, final_norm_w, lm_head_w, cos3, sin_lo3, sin_hi3, bias):
    b, s, h = x.shape
    m = b * s
    v = lm_head_w.shape[1]
    n_layers = fused["wqkv"].shape[0]
    inter = fused["wd"].shape[1]

    x2 = x.reshape(m, h).astype(jnp.float32)

    kern = functools.partial(_fused_part2_kernel, n_heads=N_HEADS, head_dim=HEAD_DIM,
                             inter=inter, n_layers=n_layers, eps=EPS)

    operands = (x2, cos3, sin_lo3, sin_hi3, bias,
                fused["ln1"], fused["wqkv"], fused["wo"],
                fused["ln2"], fused["wgu"], fused["wd"],
                final_norm_w, lm_head_w)

    # advisory cost model for XLA's scheduler
    flops = n_layers * (2 * m * h * (3 * h)
                        + 2 * (2 * N_HEADS * m * m * HEAD_DIM)
                        + 2 * m * h * h
                        + 2 * m * h * (2 * inter)
                        + 2 * m * inter * h) + 2 * m * h * v
    transcendentals = n_layers * (N_HEADS * m * m + m * inter + N_HEADS * m + 2 * m) + m
    bytes_accessed = int(sum(int(np.prod(a.shape)) * a.dtype.itemsize for a in operands)
                         + m * v * 4)

    # No grid / no BlockSpecs: everything (weights ~40 KB, activations ~few KB) is resident in
    # VMEM for the single kernel invocation; the only HBM writeback is the (M, 128) logits tile.
    # NOTE(v7x scale-up): at real shapes add a leading "parallel" row-tile grid axis (2 TCs) and
    # K/N weight-tiling BlockSpecs sized for the 64 MiB VMEM.
    logits2 = pl.pallas_call(
        kern,
        out_shape=jax.ShapeDtypeStruct((m, v), jnp.float32),
        compiler_params=pltpu.CompilerParams(vmem_limit_bytes=32 * 1024 * 1024),
        cost_estimate=pl.CostEstimate(flops=int(flops),
                                      transcendentals=int(transcendentals),
                                      bytes_accessed=bytes_accessed),
    )(*operands)
    return logits2.reshape(b, s, v)


# ----------------------------- deterministic param / table setup (glue) -----------------------------
def init_layer(key):
    ks = jax.random.split(key, 7)
    std = 0.02
    return dict(
        ln1=jnp.ones((1, H), jnp.float32),
        wq=jax.random.normal(ks[0], (H, H), jnp.float32) * std,
        wk=jax.random.normal(ks[1], (H, H), jnp.float32) * std,
        wv=jax.random.normal(ks[2], (H, H), jnp.float32) * std,
        wo=jax.random.normal(ks[3], (H, H), jnp.float32) * std,
        ln2=jnp.ones((1, H), jnp.float32),
        wg=jax.random.normal(ks[4], (H, INTER), jnp.float32) * std,
        wu=jax.random.normal(ks[5], (H, INTER), jnp.float32) * std,
        wd=jax.random.normal(ks[6], (INTER, H), jnp.float32) * std,
    )


def stack_and_fuse(layers):
    """Stack per-layer params into (L, ...) arrays; fuse QKV and gate/up; fold 1/sqrt(D) into Wq."""
    scale = 1.0 / float(np.sqrt(HEAD_DIM))
    wqkv = jnp.stack(
        [jnp.concatenate([lyr["wq"] * scale, lyr["wk"], lyr["wv"]], axis=1) for lyr in layers],
        axis=0).astype(jnp.bfloat16)                               # (L, H, 3H)
    wgu = jnp.stack(
        [jnp.concatenate([lyr["wg"], lyr["wu"]], axis=1) for lyr in layers],
        axis=0).astype(jnp.bfloat16)                               # (L, H, 2*INTER)
    wo = jnp.stack([lyr["wo"] for lyr in layers], axis=0).astype(jnp.bfloat16)   # (L, H, H)
    wd = jnp.stack([lyr["wd"] for lyr in layers], axis=0).astype(jnp.bfloat16)   # (L, INTER, H)
    ln1 = jnp.stack([lyr["ln1"] for lyr in layers], axis=0)        # (L, 1, H) f32
    ln2 = jnp.stack([lyr["ln2"] for lyr in layers], axis=0)
    return dict(wqkv=wqkv, wgu=wgu, wo=wo, wd=wd, ln1=ln1, ln2=ln2)


def make_rope_tables(batch, seq, head_dim, n_heads, hidden, theta):
    """RoPE tables sized for the fused (M, 3H) qkv tensor: cos/sin on q|k, identity on v."""
    half = head_dim // 2
    inv_freq = 1.0 / (theta ** (np.arange(half, dtype=np.float32) * 2.0 / head_dim))
    ang = np.outer(np.arange(seq, dtype=np.float32), inv_freq)          # (S, Dh/2)
    cos_h = np.concatenate([np.cos(ang), np.cos(ang)], axis=-1)         # (S, Dh)
    sin_h = np.concatenate([np.sin(ang), np.sin(ang)], axis=-1)
    lo = np.concatenate([np.ones(half, np.float32), np.zeros(half, np.float32)])
    sin_lo_h = -sin_h * lo               # nonzero on first half of each head (negated)
    sin_hi_h = sin_h * (1.0 - lo)        # nonzero on second half of each head

    def rows(t):                         # per-head (S, Dh) -> per-row (B*S, H)
        t = np.tile(t, (1, n_heads))                     # (S, H)
        return np.tile(t, (batch, 1)).astype(np.float32)  # (B*S, H), matches x.reshape order

    cos_qk, slo_qk, shi_qk = rows(cos_h), rows(sin_lo_h), rows(sin_hi_h)
    m = batch * seq
    ones = np.ones((m, hidden), np.float32)
    zeros = np.zeros((m, hidden), np.float32)
    cos3 = jnp.asarray(np.concatenate([cos_qk, cos_qk, ones], axis=-1))       # (M, 3H)
    sin_lo3 = jnp.asarray(np.concatenate([slo_qk, slo_qk, zeros], axis=-1))
    sin_hi3 = jnp.asarray(np.concatenate([shi_qk, shi_qk, zeros], axis=-1))
    return cos3, sin_lo3, sin_hi3


def make_mask_bias(batch, seq):
    """Additive block-diagonal causal mask over the fused batch*seq rows (0 keep / -1e30 mask)."""
    m = batch * seq
    r = np.arange(m)
    same_batch = (r[:, None] // seq) == (r[None, :] // seq)
    causal = r[:, None] >= r[None, :]
    return jnp.asarray(np.where(same_batch & causal, 0.0, -1e30).astype(np.float32))


# TODO(synk): the original module's `nn.Sequential(children[len//2:])` slicing and the
# `hasattr(output, 'logits')` check are Python-level module plumbing with no kernel
# equivalent; they are realized here as a fixed stack of N_LAYERS decoder layers + norm + lm_head.

if __name__ == "__main__":
    key = jax.random.PRNGKey(0)
    kx, kp, kh = jax.random.split(key, 3)

    # hidden states coming from ModelPart1
    x = jax.random.normal(kx, (B, S, H), jnp.float32)

    layer_keys = jax.random.split(kp, N_LAYERS)
    fused = stack_and_fuse([init_layer(k) for k in layer_keys])
    final_norm_w = jnp.ones((1, H), jnp.float32)
    lm_head_w = (jax.random.normal(kh, (H, VOCAB), jnp.float32) * 0.02).astype(jnp.bfloat16)

    cos3, sin_lo3, sin_hi3 = make_rope_tables(B, S, HEAD_DIM, N_HEADS, H, ROPE_THETA)
    bias = make_mask_bias(B, S)

    logits = run_model_part2(x, fused, final_norm_w, lm_head_w, cos3, sin_lo3, sin_hi3, bias)
    logits = jax.block_until_ready(logits)
    assert logits.shape == (B, S, VOCAB)
    assert bool(jnp.all(jnp.isfinite(logits)))
    print("KERNEL_OK")
</pallas_src>

<mosaic_0001>
module attributes {stable_mosaic.version = 11 : i64} {
  func.func @_fused_part2_kernel(%arg0: memref<16x32xf32, #tpu.memory_space<vmem>>, %arg1: memref<16x96xf32, #tpu.memory_space<vmem>>, %arg2: memref<16x96xf32, #tpu.memory_space<vmem>>, %arg3: memref<16x96xf32, #tpu.memory_space<vmem>>, %arg4: memref<16x16xf32, #tpu.memory_space<vmem>>, %arg5: memref<2x1x32xf32, #tpu.memory_space<vmem>>, %arg6: memref<2x32x96xbf16, #tpu.memory_space<vmem>>, %arg7: memref<2x32x32xbf16, #tpu.memory_space<vmem>>, %arg8: memref<2x1x32xf32, #tpu.memory_space<vmem>>, %arg9: memref<2x32x128xbf16, #tpu.memory_space<vmem>>, %arg10: memref<2x64x32xbf16, #tpu.memory_space<vmem>>, %arg11: memref<1x32xf32, #tpu.memory_space<vmem>>, %arg12: memref<32x128xbf16, #tpu.memory_space<vmem>>, %arg13: memref<16x128xf32, #tpu.memory_space<vmem>>) attributes {dimension_semantics = [], scalar_prefetch = 0 : i64, scratch_operands = 0 : i64, tpu.core_type = #tpu.core_type<tc>} {
    %c0 = arith.constant 0 : index
    %c0_0 = arith.constant 0 : index
    %0 = vector.load %arg1[%c0, %c0_0] : memref<16x96xf32, #tpu.memory_space<vmem>>, vector<16x96xf32>
    %c0_1 = arith.constant 0 : index
    %c0_2 = arith.constant 0 : index
    %1 = vector.load %arg2[%c0_1, %c0_2] : memref<16x96xf32, #tpu.memory_space<vmem>>, vector<16x96xf32>
    %c0_3 = arith.constant 0 : index
    %c0_4 = arith.constant 0 : index
    %2 = vector.load %arg3[%c0_3, %c0_4] : memref<16x96xf32, #tpu.memory_space<vmem>>, vector<16x96xf32>
    %c0_5 = arith.constant 0 : index
    %c0_6 = arith.constant 0 : index
    %3 = vector.load %arg4[%c0_5, %c0_6] : memref<16x16xf32, #tpu.memory_space<vmem>>, vector<16x16xf32>
    %c0_7 = arith.constant 0 : index
    %c0_8 = arith.constant 0 : index
    %4 = vector.load %arg0[%c0_7, %c0_8] : memref<16x32xf32, #tpu.memory_space<vmem>>, vector<16x32xf32>
    %c0_9 = arith.constant 0 : index
    %c0_10 = arith.constant 0 : index
    %c0_11 = arith.constant 0 : index
    %5 = vector.load %arg5[%c0_9, %c0_10, %c0_11] : memref<2x1x32xf32, #tpu.memory_space<vmem>>, vector<1x1x32xf32>
    %6 = vector.shape_cast %5 : vector<1x1x32xf32> to vector<1x32xf32>
    %7 = arith.mulf %4, %4 : vector<16x32xf32>
    %cst = arith.constant dense<0.000000e+00> : vector<16xf32>
    %8 = vector.multi_reduction <add>, %7, %cst [1] : vector<16x32xf32> to vector<16xf32>
    %9 = vector.shape_cast %8 : vector<16xf32> to vector<16x1xf32>
    %cst_12 = arith.constant 3.200000e+01 : f32
    %10 = vector.broadcast %cst_12 : f32 to vector<16x1xf32>
    %11 = arith.divf %9, %10 : vector<16x1xf32>
    %cst_13 = arith.constant 9.99999974E-6 : f32
    %12 = vector.broadcast %cst_13 : f32 to vector<16x1xf32>
    %13 = arith.addf %11, %12 : vector<16x1xf32>
    %14 = math.rsqrt %13 : vector<16x1xf32>
    %15 = vector.broadcast %14 : vector<16x1xf32> to vector<16x32xf32>
    %16 = arith.mulf %4, %15 : vector<16x32xf32>
    %17 = vector.broadcast %6 : vector<1x32xf32> to vector<16x32xf32>
    %18 = arith.mulf %16, %17 : vector<16x32xf32>
    %19 = arith.truncf %18 : vector<16x32xf32> to vector<16x32xbf16>
    %c0_14 = arith.constant 0 : index
    %c0_15 = arith.constant 0 : index
    %c0_16 = arith.constant 0 : index
    %20 = vector.load %arg6[%c0_14, %c0_15, %c0_16] : memref<2x32x96xbf16, #tpu.memory_space<vmem>>, vector<1x32x96xbf16>
    %21 = vector.shape_cast %20 : vector<1x32x96xbf16> to vector<32x96xbf16>
    %cst_17 = arith.constant dense<0.000000e+00> : vector<16x96xf32>
    %22 = tpu.matmul %19, %21, %cst_17 {dimension_numbers = #tpu.dot_dimension_numbers<[1], [0], [0], [1], [0, 0, 1, 1], [], []>} : vector<16x32xbf16>, vector<32x96xbf16>, vector<16x96xf32> -> vector<16x96xf32>
    %23 = arith.mulf %22, %0 : vector<16x96xf32>
    %24 = vector.extract_strided_slice %22 {offsets = [0, 4], sizes = [16, 92], strides = [1, 1]} : vector<16x96xf32> to vector<16x92xf32>
    %25 = vector.extract_strided_slice %22 {offsets = [0, 0], sizes = [16, 4], strides = [1, 1]} : vector<16x96xf32> to vector<16x4xf32>
    %26 = tpu.concatenate %24, %25 in 1 : vector<16x92xf32>, vector<16x4xf32> -> vector<16x96xf32>
    %27 = arith.mulf %26, %1 : vector<16x96xf32>
    %28 = arith.addf %23, %27 : vector<16x96xf32>
    %29 = vector.extract_strided_slice %22 {offsets = [0, 92], sizes = [16, 4], strides = [1, 1]} : vector<16x96xf32> to vector<16x4xf32>
    %30 = vector.extract_strided_slice %22 {offsets = [0, 0], sizes = [16, 92], strides = [1, 1]} : vector<16x96xf32> to vector<16x92xf32>
    %31 = tpu.concatenate %29, %30 in 1 : vector<16x4xf32>, vector<16x92xf32> -> vector<16x96xf32>
    %32 = arith.mulf %31, %2 : vector<16x96xf32>
    %33 = arith.addf %28, %32 : vector<16x96xf32>
    %34 = arith.truncf %33 : vector<16x96xf32> to vector<16x96xbf16>
    %35 = vector.extract_strided_slice %34 {offsets = [0, 0], sizes = [16, 32], strides = [1, 1]} : vector<16x96xbf16> to vector<16x32xbf16>
    %36 = vector.extract_strided_slice %35 {offsets = [0, 0], sizes = [16, 8], strides = [1, 1]} : vector<16x32xbf16> to vector<16x8xbf16>
    %37 = vector.extract_strided_slice %35 {offsets = [0, 8], sizes = [16, 8], strides = [1, 1]} : vector<16x32xbf16> to vector<16x8xbf16>
    %38 = vector.extract_strided_slice %35 {offsets = [0, 16], sizes = [16, 8], strides = [1, 1]} : vector<16x32xbf16> to vector<16x8xbf16>
    %39 = vector.extract_strided_slice %35 {offsets = [0, 24], sizes = [16, 8], strides = [1, 1]} : vector<16x32xbf16> to vector<16x8xbf16>
    %40 = vector.shape_cast %36 : vector<16x8xbf16> to vector<1x16x8xbf16>
    %41 = vector.shape_cast %37 : vector<16x8xbf16> to vector<1x16x8xbf16>
    %42 = vector.shape_cast %38 : vector<16x8xbf16> to vector<1x16x8xbf16>
    %43 = vector.shape_cast %39 : vector<16x8xbf16> to vector<1x16x8xbf16>
    %44 = tpu.concatenate %40, %41, %42, %43 in 0 : vector<1x16x8xbf16>, vector<1x16x8xbf16>, vector<1x16x8xbf16>, vector<1x16x8xbf16> -> vector<4x16x8xbf16>
    %45 = vector.extract_strided_slice %34 {offsets = [0, 32], sizes = [16, 32], strides = [1, 1]} : vector<16x96xbf16> to vector<16x32xbf16>
    %46 = vector.extract_strided_slice %45 {offsets = [0, 0], sizes = [16, 8], strides = [1, 1]} : vector<16x32xbf16> to vector<16x8xbf16>
    %47 = vector.extract_strided_slice %45 {offsets = [0, 8], sizes = [16, 8], strides = [1, 1]} : vector<16x32xbf16> to vector<16x8xbf16>
    %48 = vector.extract_strided_slice %45 {offsets = [0, 16], sizes = [16, 8], strides = [1, 1]} : vector<16x32xbf16> to vector<16x8xbf16>
    %49 = vector.extract_strided_slice %45 {offsets = [0, 24], sizes = [16, 8], strides = [1, 1]} : vector<16x32xbf16> to vector<16x8xbf16>
    %50 = vector.shape_cast %46 : vector<16x8xbf16> to vector<1x16x8xbf16>
    %51 = vector.shape_cast %47 : vector<16x8xbf16> to vector<1x16x8xbf16>
    %52 = vector.shape_cast %48 : vector<16x8xbf16> to vector<1x16x8xbf16>
    %53 = vector.shape_cast %49 : vector<16x8xbf16> to vector<1x16x8xbf16>
    %54 = tpu.concatenate %50, %51, %52, %53 in 0 : vector<1x16x8xbf16>, vector<1x16x8xbf16>, vector<1x16x8xbf16>, vector<1x16x8xbf16> -> vector<4x16x8xbf16>
    %55 = vector.extract_strided_slice %34 {offsets = [0, 64], sizes = [16, 32], strides = [1, 1]} : vector<16x96xbf16> to vector<16x32xbf16>
    %56 = vector.extract_strided_slice %55 {offsets = [0, 0], sizes = [16, 8], strides = [1, 1]} : vector<16x32xbf16> to vector<16x8xbf16>
    %57 = vector.extract_strided_slice %55 {offsets = [0, 8], sizes = [16, 8], strides = [1, 1]} : vector<16x32xbf16> to vector<16x8xbf16>
    %58 = vector.extract_strided_slice %55 {offsets = [0, 16], sizes = [16, 8], strides = [1, 1]} : vector<16x32xbf16> to vector<16x8xbf16>
    %59 = vector.extract_strided_slice %55 {offsets = [0, 24], sizes = [16, 8], strides = [1, 1]} : vector<16x32xbf16> to vector<16x8xbf16>
    %60 = vector.shape_cast %56 : vector<16x8xbf16> to vector<1x16x8xbf16>
    %61 = vector.shape_cast %57 : vector<16x8xbf16> to vector<1x16x8xbf16>
    %62 = vector.shape_cast %58 : vector<16x8xbf16> to vector<1x16x8xbf16>
    %63 = vector.shape_cast %59 : vector<16x8xbf16> to vector<1x16x8xbf16>
    %64 = tpu.concatenate %60, %61, %62, %63 in 0 : vector<1x16x8xbf16>, vector<1x16x8xbf16>, vector<1x16x8xbf16>, vector<1x16x8xbf16> -> vector<4x16x8xbf16>
    "tpu.trace_start"() <{level = 10 : i32, message = "hqd,hkd->hqk"}> : () -> ()
    %cst_18 = arith.constant dense<0.000000e+00> : vector<4x16x16xf32>
    %65 = tpu.matmul %44, %54, %cst_18 {dimension_numbers = #tpu.dot_dimension_numbers<[2], [2], [1], [1], [0, 0, 0, 1, 1, 1], [0], [0]>} : vector<4x16x8xbf16>, vector<4x16x8xbf16>, vector<4x16x16xf32> -> vector<4x16x16xf32>
    "tpu.trace_stop"() : () -> ()
    %66 = vector.shape_cast %3 : vector<16x16xf32> to vector<1x16x16xf32>
    %67 = vector.broadcast %66 : vector<1x16x16xf32> to vector<4x16x16xf32>
    %68 = arith.addf %65, %67 : vector<4x16x16xf32>
    %cst_19 = arith.constant dense<0xFF800000> : vector<4x16xf32>
    %69 = vector.multi_reduction <maximumf>, %68, %cst_19 [2] : vector<4x16x16xf32> to vector<4x16xf32>
    %70 = vector.shape_cast %69 : vector<4x16xf32> to vector<4x16x1xf32>
    %71 = vector.broadcast %70 : vector<4x16x1xf32> to vector<4x16x16xf32>
    %72 = arith.subf %68, %71 : vector<4x16x16xf32>
    %73 = math.exp %72 : vector<4x16x16xf32>
    %cst_20 = arith.constant dense<0.000000e+00> : vector<4x16xf32>
    %74 = vector.multi_reduction <add>, %73, %cst_20 [2] : vector<4x16x16xf32> to vector<4x16xf32>
    %75 = vector.shape_cast %74 : vector<4x16xf32> to vector<4x16x1xf32>
    %76 = tpu.reciprocal %75 {approx = true} : vector<4x16x1xf32> -> vector<4x16x1xf32>
    %77 = vector.broadcast %76 : vector<4x16x1xf32> to vector<4x16x16xf32>
    %78 = arith.mulf %73, %77 : vector<4x16x16xf32>
    %79 = arith.truncf %78 : vector<4x16x16xf32> to vector<4x16x16xbf16>
    "tpu.trace_start"() <{level = 10 : i32, message = "hqk,hkd->hqd"}> : () -> ()
    %cst_21 = arith.constant dense<0.000000e+00> : vector<4x16x8xf32>
    %80 = tpu.matmul %79, %64, %cst_21 {dimension_numbers = #tpu.dot_dimension_numbers<[2], [1], [1], [2], [0, 0, 0, 1, 1, 2], [0], [0]>} : vector<4x16x16xbf16>, vector<4x16x8xbf16>, vector<4x16x8xf32> -> vector<4x16x8xf32>
    "tpu.trace_stop"() : () -> ()
    %81 = vector.extract_strided_slice %80 {offsets = [0, 0, 0], sizes = [1, 16, 8], strides = [1, 1, 1]} : vector<4x16x8xf32> to vector<1x16x8xf32>
    %82 = vector.shape_cast %81 : vector<1x16x8xf32> to vector<16x8xf32>
    %83 = vector.extract_strided_slice %80 {offsets = [1, 0, 0], sizes = [1, 16, 8], strides = [1, 1, 1]} : vector<4x16x8xf32> to vector<1x16x8xf32>
    %84 = vector.shape_cast %83 : vector<1x16x8xf32> to vector<16x8xf32>
    %85 = vector.extract_strided_slice %80 {offsets = [2, 0, 0], sizes = [1, 16, 8], strides = [1, 1, 1]} : vector<4x16x8xf32> to vector<1x16x8xf32>
    %86 = vector.shape_cast %85 : vector<1x16x8xf32> to vector<16x8xf32>
    %87 = vector.extract_strided_slice %80 {offsets = [3, 0, 0], sizes = [1, 16, 8], strides = [1, 1, 1]} : vector<4x16x8xf32> to vector<1x16x8xf32>
    %88 = vector.shape_cast %87 : vector<1x16x8xf32> to vector<16x8xf32>
    %89 = tpu.concatenate %82, %84, %86, %88 in 1 : vector<16x8xf32>, vector<16x8xf32>, vector<16x8xf32>, vector<16x8xf32> -> vector<16x32xf32>
    %90 = arith.truncf %89 : vector<16x32xf32> to vector<16x32xbf16>
    %c0_22 = arith.constant 0 : index
    %c0_23 = arith.constant 0 : index
    %c0_24 = arith.constant 0 : index
    %91 = vector.load %arg7[%c0_22, %c0_23, %c0_24] : memref<2x32x32xbf16, #tpu.memory_space<vmem>>, vector<1x32x32xbf16>
    %92 = vector.shape_cast %91 : vector<1x32x32xbf16> to vector<32x32xbf16>
    %cst_25 = arith.constant dense<0.000000e+00> : vector<16x32xf32>
    %93 = tpu.matmul %90, %92, %cst_25 {dimension_numbers = #tpu.dot_dimension_numbers<[1], [0], [0], [1], [0, 0, 1, 1], [], []>} : vector<16x32xbf16>, vector<32x32xbf16>, vector<16x32xf32> -> vector<16x32xf32>
    %94 = arith.addf %4, %93 : vector<16x32xf32>
    %c0_26 = arith.constant 0 : index
    %c0_27 = arith.constant 0 : index
    %c0_28 = arith.constant 0 : index
    %95 = vector.load %arg8[%c0_26, %c0_27, %c0_28] : memref<2x1x32xf32, #tpu.memory_space<vmem>>, vector<1x1x32xf32>
    %96 = vector.shape_cast %95 : vector<1x1x32xf32> to vector<1x32xf32>
    %97 = arith.mulf %94, %94 : vector<16x32xf32>
    %cst_29 = arith.constant dense<0.000000e+00> : vector<16xf32>
    %98 = vector.multi_reduction <add>, %97, %cst_29 [1] : vector<16x32xf32> to vector<16xf32>
    %99 = vector.shape_cast %98 : vector<16xf32> to vector<16x1xf32>
    %cst_30 = arith.constant 3.200000e+01 : f32
    %100 = vector.broadcast %cst_30 : f32 to vector<16x1xf32>
    %101 = arith.divf %99, %100 : vector<16x1xf32>
    %cst_31 = arith.constant 9.99999974E-6 : f32
    %102 = vector.broadcast %cst_31 : f32 to vector<16x1xf32>
    %103 = arith.addf %101, %102 : vector<16x1xf32>
    %104 = math.rsqrt %103 : vector<16x1xf32>
    %105 = vector.broadcast %104 : vector<16x1xf32> to vector<16x32xf32>
    %106 = arith.mulf %94, %105 : vector<16x32xf32>
    %107 = vector.broadcast %96 : vector<1x32xf32> to vector<16x32xf32>
    %108 = arith.mulf %106, %107 : vector<16x32xf32>
    %109 = arith.truncf %108 : vector<16x32xf32> to vector<16x32xbf16>
    %c0_32 = arith.constant 0 : index
    %c0_33 = arith.constant 0 : index
    %c0_34 = arith.constant 0 : index
    %110 = vector.load %arg9[%c0_32, %c0_33, %c0_34] : memref<2x32x128xbf16, #tpu.memory_space<vmem>>, vector<1x32x128xbf16>
    %111 = vector.shape_cast %110 : vector<1x32x128xbf16> to vector<32x128xbf16>
    %cst_35 = arith.constant dense<0.000000e+00> : vector<16x128xf32>
    %112 = tpu.matmul %109, %111, %cst_35 {dimension_numbers = #tpu.dot_dimension_numbers<[1], [0], [0], [1], [0, 0, 1, 1], [], []>} : vector<16x32xbf16>, vector<32x128xbf16>, vector<16x128xf32> -> vector<16x128xf32>
    %113 = vector.extract_strided_slice %112 {offsets = [0, 0], sizes = [16, 64], strides = [1, 1]} : vector<16x128xf32> to vector<16x64xf32>
    %114 = vector.extract_strided_slice %112 {offsets = [0, 64], sizes = [16, 64], strides = [1, 1]} : vector<16x128xf32> to vector<16x64xf32>
    %115 = arith.negf %113 : vector<16x64xf32>
    %116 = math.exp %115 : vector<16x64xf32>
    %cst_36 = arith.constant 1.000000e+00 : f32
    %117 = vector.broadcast %cst_36 : f32 to vector<16x64xf32>
    %118 = arith.addf %117, %116 : vector<16x64xf32>
    %119 = arith.divf %117, %118 : vector<16x64xf32>
    %120 = arith.mulf %113, %119 : vector<16x64xf32>
    %121 = arith.mulf %120, %114 : vector<16x64xf32>
    %122 = arith.truncf %121 : vector<16x64xf32> to vector<16x64xbf16>
    %c0_37 = arith.constant 0 : index
    %c0_38 = arith.constant 0 : index
    %c0_39 = arith.constant 0 : index
    %123 = vector.load %arg10[%c0_37, %c0_38, %c0_39] : memref<2x64x32xbf16, #tpu.memory_space<vmem>>, vector<1x64x32xbf16>
    %124 = vector.shape_cast %123 : vector<1x64x32xbf16> to vector<64x32xbf16>
    %cst_40 = arith.constant dense<0.000000e+00> : vector<16x32xf32>
    %125 = tpu.matmul %122, %124, %cst_40 {dimension_numbers = #tpu.dot_dimension_numbers<[1], [0], [0], [1], [0, 0, 1, 1], [], []>} : vector<16x64xbf16>, vector<64x32xbf16>, vector<16x32xf32> -> vector<16x32xf32>
    %126 = arith.addf %94, %125 : vector<16x32xf32>
    %c1 = arith.constant 1 : index
    %c0_41 = arith.constant 0 : index
    %c0_42 = arith.constant 0 : index
    %127 = vector.load %arg5[%c1, %c0_41, %c0_42] : memref<2x1x32xf32, #tpu.memory_space<vmem>>, vector<1x1x32xf32>
    %128 = vector.shape_cast %127 : vector<1x1x32xf32> to vector<1x32xf32>
    %129 = arith.mulf %126, %126 : vector<16x32xf32>
    %cst_43 = arith.constant dense<0.000000e+00> : vector<16xf32>
    %130 = vector.multi_reduction <add>, %129, %cst_43 [1] : vector<16x32xf32> to vector<16xf32>
    %131 = vector.shape_cast %130 : vector<16xf32> to vector<16x1xf32>
    %cst_44 = arith.constant 3.200000e+01 : f32
    %132 = vector.broadcast %cst_44 : f32 to vector<16x1xf32>
    %133 = arith.divf %131, %132 : vector<16x1xf32>
    %cst_45 = arith.constant 9.99999974E-6 : f32
    %134 = vector.broadcast %cst_45 : f32 to vector<16x1xf32>
    %135 = arith.addf %133, %134 : vector<16x1xf32>
    %136 = math.rsqrt %135 : vector<16x1xf32>
    %137 = vector.broadcast %136 : vector<16x1xf32> to vector<16x32xf32>
    %138 = arith.mulf %126, %137 : vector<16x32xf32>
    %139 = vector.broadcast %128 : vector<1x32xf32> to vector<16x32xf32>
    %140 = arith.mulf %138, %139 : vector<16x32xf32>
    %141 = arith.truncf %140 : vector<16x32xf32> to vector<16x32xbf16>
    %c1_46 = arith.constant 1 : index
    %c0_47 = arith.constant 0 : index
    %c0_48 = arith.constant 0 : index
    %142 = vector.load %arg6[%c1_46, %c0_47, %c0_48] : memref<2x32x96xbf16, #tpu.memory_space<vmem>>, vector<1x32x96xbf16>
    %143 = vector.shape_cast %142 : vector<1x32x96xbf16> to vector<32x96xbf16>
    %cst_49 = arith.constant dense<0.000000e+00> : vector<16x96xf32>
    %144 = tpu.matmul %141, %143, %cst_49 {dimension_numbers = #tpu.dot_dimension_numbers<[1], [0], [0], [1], [0, 0, 1, 1], [], []>} : vector<16x32xbf16>, vector<32x96xbf16>, vector<16x96xf32> -> vector<16x96xf32>
    %145 = arith.mulf %144, %0 : vector<16x96xf32>
    %146 = vector.extract_strided_slice %144 {offsets = [0, 4], sizes = [16, 92], strides = [1, 1]} : vector<16x96xf32> to vector<16x92xf32>
    %147 = vector.extract_strided_slice %144 {offsets = [0, 0], sizes = [16, 4], strides = [1, 1]} : vector<16x96xf32> to vector<16x4xf32>
    %148 = tpu.concatenate %146, %147 in 1 : vector<16x92xf32>, vector<16x4xf32> -> vector<16x96xf32>
    %149 = arith.mulf %148, %1 : vector<16x96xf32>
    %150 = arith.addf %145, %149 : vector<16x96xf32>
    %151 = vector.extract_strided_slice %144 {offsets = [0, 92], sizes = [16, 4], strides = [1, 1]} : vector<16x96xf32> to vector<16x4xf32>
    %152 = vector.extract_strided_slice %144 {offsets = [0, 0], sizes = [16, 92], strides = [1, 1]} : vector<16x96xf32> to vector<16x92xf32>
    %153 = tpu.concatenate %151, %152 in 1 : vector<16x4xf32>, vector<16x92xf32> -> vector<16x96xf32>
    %154 = arith.mulf %153, %2 : vector<16x96xf32>
    %155 = arith.addf %150, %154 : vector<16x96xf32>
    %156 = arith.truncf %155 : vector<16x96xf32> to vector<16x96xbf16>
    %157 = vector.extract_strided_slice %156 {offsets = [0, 0], sizes = [16, 32], strides = [1, 1]} : vector<16x96xbf16> to vector<16x32xbf16>
    %158 = vector.extract_strided_slice %157 {offsets = [0, 0], sizes = [16, 8], strides = [1, 1]} : vector<16x32xbf16> to vector<16x8xbf16>
    %159 = vector.extract_strided_slice %157 {offsets = [0, 8], sizes = [16, 8], strides = [1, 1]} : vector<16x32xbf16> to vector<16x8xbf16>
    %160 = vector.extract_strided_slice %157 {offsets = [0, 16], sizes = [16, 8], strides = [1, 1]} : vector<16x32xbf16> to vector<16x8xbf16>
    %161 = vector.extract_strided_slice %157 {offsets = [0, 24], sizes = [16, 8], strides = [1, 1]} : vector<16x32xbf16> to vector<16x8xbf16>
    %162 = vector.shape_cast %158 : vector<16x8xbf16> to vector<1x16x8xbf16>
    %163 = vector.shape_cast %159 : vector<16x8xbf16> to vector<1x16x8xbf16>
    %164 = vector.shape_cast %160 : vector<16x8xbf16> to vector<1x16x8xbf16>
    %165 = vector.shape_cast %161 : vector<16x8xbf16> to vector<1x16x8xbf16>
    %166 = tpu.concatenate %162, %163, %164, %165 in 0 : vector<1x16x8xbf16>, vector<1x16x8xbf16>, vector<1x16x8xbf16>, vector<1x16x8xbf16> -> vector<4x16x8xbf16>
    %167 = vector.extract_strided_slice %156 {offsets = [0, 32], sizes = [16, 32], strides = [1, 1]} : vector<16x96xbf16> to vector<16x32xbf16>
    %168 = vector.extract_strided_slice %167 {offsets = [0, 0], sizes = [16, 8], strides = [1, 1]} : vector<16x32xbf16> to vector<16x8xbf16>
    %169 = vector.extract_strided_slice %167 {offsets = [0, 8], sizes = [16, 8], strides = [1, 1]} : vector<16x32xbf16> to vector<16x8xbf16>
    %170 = vector.extract_strided_slice %167 {offsets = [0, 16], sizes = [16, 8], strides = [1, 1]} : vector<16x32xbf16> to vector<16x8xbf16>
    %171 = vector.extract_strided_slice %167 {offsets = [0, 24], sizes = [16, 8], strides = [1, 1]} : vector<16x32xbf16> to vector<16x8xbf16>
    %172 = vector.shape_cast %168 : vector<16x8xbf16> to vector<1x16x8xbf16>
    %173 = vector.shape_cast %169 : vector<16x8xbf16> to vector<1x16x8xbf16>
    %174 = vector.shape_cast %170 : vector<16x8xbf16> to vector<1x16x8xbf16>
    %175 = vector.shape_cast %171 : vector<16x8xbf16> to vector<1x16x8xbf16>
    %176 = tpu.concatenate %172, %173, %174, %175 in 0 : vector<1x16x8xbf16>, vector<1x16x8xbf16>, vector<1x16x8xbf16>, vector<1x16x8xbf16> -> vector<4x16x8xbf16>
    %177 = vector.extract_strided_slice %156 {offsets = [0, 64], sizes = [16, 32], strides = [1, 1]} : vector<16x96xbf16> to vector<16x32xbf16>
    %178 = vector.extract_strided_slice %177 {offsets = [0, 0], sizes = [16, 8], strides = [1, 1]} : vector<16x32xbf16> to vector<16x8xbf16>
    %179 = vector.extract_strided_slice %177 {offsets = [0, 8], sizes = [16, 8], strides = [1, 1]} : vector<16x32xbf16> to vector<16x8xbf16>
    %180 = vector.extract_strided_slice %177 {offsets = [0, 16], sizes = [16, 8], strides = [1, 1]} : vector<16x32xbf16> to vector<16x8xbf16>
    %181 = vector.extract_strided_slice %177 {offsets = [0, 24], sizes = [16, 8], strides = [1, 1]} : vector<16x32xbf16> to vector<16x8xbf16>
    %182 = vector.shape_cast %178 : vector<16x8xbf16> to vector<1x16x8xbf16>
    %183 = vector.shape_cast %179 : vector<16x8xbf16> to vector<1x16x8xbf16>
    %184 = vector.shape_cast %180 : vector<16x8xbf16> to vector<1x16x8xbf16>
    %185 = vector.shape_cast %181 : vector<16x8xbf16> to vector<1x16x8xbf16>
    %186 = tpu.concatenate %182, %183, %184, %185 in 0 : vector<1x16x8xbf16>, vector<1x16x8xbf16>, vector<1x16x8xbf16>, vector<1x16x8xbf16> -> vector<4x16x8xbf16>
    "tpu.trace_start"() <{level = 10 : i32, message = "hqd,hkd->hqk"}> : () -> ()
    %cst_50 = arith.constant dense<0.000000e+00> : vector<4x16x16xf32>
    %187 = tpu.matmul %166, %176, %cst_50 {dimension_numbers = #tpu.dot_dimension_numbers<[2], [2], [1], [1], [0, 0, 0, 1, 1, 1], [0], [0]>} : vector<4x16x8xbf16>, vector<4x16x8xbf16>, vector<4x16x16xf32> -> vector<4x16x16xf32>
    "tpu.trace_stop"() : () -> ()
    %188 = vector.shape_cast %3 : vector<16x16xf32> to vector<1x16x16xf32>
    %189 = vector.broadcast %188 : vector<1x16x16xf32> to vector<4x16x16xf32>
    %190 = arith.addf %187, %189 : vector<4x16x16xf32>
    %cst_51 = arith.constant dense<0xFF800000> : vector<4x16xf32>
    %191 = vector.multi_reduction <maximumf>, %190, %cst_51 [2] : vector<4x16x16xf32> to vector<4x16xf32>
    %192 = vector.shape_cast %191 : vector<4x16xf32> to vector<4x16x1xf32>
    %193 = vector.broadcast %192 : vector<4x16x1xf32> to vector<4x16x16xf32>
    %194 = arith.subf %190, %193 : vector<4x16x16xf32>
    %195 = math.exp %194 : vector<4x16x16xf32>
    %cst_52 = arith.constant dense<0.000000e+00> : vector<4x16xf32>
    %196 = vector.multi_reduction <add>, %195, %cst_52 [2] : vector<4x16x16xf32> to vector<4x16xf32>
    %197 = vector.shape_cast %196 : vector<4x16xf32> to vector<4x16x1xf32>
    %198 = tpu.reciprocal %197 {approx = true} : vector<4x16x1xf32> -> vector<4x16x1xf32>
    %199 = vector.broadcast %198 : vector<4x16x1xf32> to vector<4x16x16xf32>
    %200 = arith.mulf %195, %199 : vector<4x16x16xf32>
    %201 = arith.truncf %200 : vector<4x16x16xf32> to vector<4x16x16xbf16>
    "tpu.trace_start"() <{level = 10 : i32, message = "hqk,hkd->hqd"}> : () -> ()
    %cst_53 = arith.constant dense<0.000000e+00> : vector<4x16x8xf32>
    %202 = tpu.matmul %201, %186, %cst_53 {dimension_numbers = #tpu.dot_dimension_numbers<[2], [1], [1], [2], [0, 0, 0, 1, 1, 2], [0], [0]>} : vector<4x16x16xbf16>, vector<4x16x8xbf16>, vector<4x16x8xf32> -> vector<4x16x8xf32>
    "tpu.trace_stop"() : () -> ()
    %203 = vector.extract_strided_slice %202 {offsets = [0, 0, 0], sizes = [1, 16, 8], strides = [1, 1, 1]} : vector<4x16x8xf32> to vector<1x16x8xf32>
    %204 = vector.shape_cast %203 : vector<1x16x8xf32> to vector<16x8xf32>
    %205 = vector.extract_strided_slice %202 {offsets = [1, 0, 0], sizes = [1, 16, 8], strides = [1, 1, 1]} : vector<4x16x8xf32> to vector<1x16x8xf32>
    %206 = vector.shape_cast %205 : vector<1x16x8xf32> to vector<16x8xf32>
    %207 = vector.extract_strided_slice %202 {offsets = [2, 0, 0], sizes = [1, 16, 8], strides = [1, 1, 1]} : vector<4x16x8xf32> to vector<1x16x8xf32>
    %208 = vector.shape_cast %207 : vector<1x16x8xf32> to vector<16x8xf32>
    %209 = vector.extract_strided_slice %202 {offsets = [3, 0, 0], sizes = [1, 16, 8], strides = [1, 1, 1]} : vector<4x16x8xf32> to vector<1x16x8xf32>
    %210 = vector.shape_cast %209 : vector<1x16x8xf32> to vector<16x8xf32>
    %211 = tpu.concatenate %204, %206, %208, %210 in 1 : vector<16x8xf32>, vector<16x8xf32>, vector<16x8xf32>, vector<16x8xf32> -> vector<16x32xf32>
    %212 = arith.truncf %211 : vector<16x32xf32> to vector<16x32xbf16>
    %c1_54 = arith.constant 1 : index
    %c0_55 = arith.constant 0 : index
    %c0_56 = arith.constant 0 : index
    %213 = vector.load %arg7[%c1_54, %c0_55, %c0_56] : memref<2x32x32xbf16, #tpu.memory_space<vmem>>, vector<1x32x32xbf16>
    %214 = vector.shape_cast %213 : vector<1x32x32xbf16> to vector<32x32xbf16>
    %cst_57 = arith.constant dense<0.000000e+00> : vector<16x32xf32>
    %215 = tpu.matmul %212, %214, %cst_57 {dimension_numbers = #tpu.dot_dimension_numbers<[1], [0], [0], [1], [0, 0, 1, 1], [], []>} : vector<16x32xbf16>, vector<32x32xbf16>, vector<16x32xf32> -> vector<16x32xf32>
    %216 = arith.addf %126, %215 : vector<16x32xf32>
    %c1_58 = arith.constant 1 : index
    %c0_59 = arith.constant 0 : index
    %c0_60 = arith.constant 0 : index
    %217 = vector.load %arg8[%c1_58, %c0_59, %c0_60] : memref<2x1x32xf32, #tpu.memory_space<vmem>>, vector<1x1x32xf32>
    %218 = vector.shape_cast %217 : vector<1x1x32xf32> to vector<1x32xf32>
    %219 = arith.mulf %216, %216 : vector<16x32xf32>
    %cst_61 = arith.constant dense<0.000000e+00> : vector<16xf32>
    %220 = vector.multi_reduction <add>, %219, %cst_61 [1] : vector<16x32xf32> to vector<16xf32>
    %221 = vector.shape_cast %220 : vector<16xf32> to vector<16x1xf32>
    %cst_62 = arith.constant 3.200000e+01 : f32
    %222 = vector.broadcast %cst_62 : f32 to vector<16x1xf32>
    %223 = arith.divf %221, %222 : vector<16x1xf32>
    %cst_63 = arith.constant 9.99999974E-6 : f32
    %224 = vector.broadcast %cst_63 : f32 to vector<16x1xf32>
    %225 = arith.addf %223, %224 : vector<16x1xf32>
    %226 = math.rsqrt %225 : vector<16x1xf32>
    %227 = vector.broadcast %226 : vector<16x1xf32> to vector<16x32xf32>
    %228 = arith.mulf %216, %227 : vector<16x32xf32>
    %229 = vector.broadcast %218 : vector<1x32xf32> to vector<16x32xf32>
    %230 = arith.mulf %228, %229 : vector<16x32xf32>
    %231 = arith.truncf %230 : vector<16x32xf32> to vector<16x32xbf16>
    %c1_64 = arith.constant 1 : index
    %c0_65 = arith.constant 0 : index
    %c0_66 = arith.constant 0 : index
    %232 = vector.load %arg9[%c1_64, %c0_65, %c0_66] : memref<2x32x128xbf16, #tpu.memory_space<vmem>>, vector<1x32x128xbf16>
    %233 = vector.shape_cast %232 : vector<1x32x128xbf16> to vector<32x128xbf16>
    %cst_67 = arith.constant dense<0.000000e+00> : vector<16x128xf32>
    %234 = tpu.matmul %231, %233, %cst_67 {dimension_numbers = #tpu.dot_dimension_numbers<[1], [0], [0], [1], [0, 0, 1, 1], [], []>} : vector<16x32xbf16>, vector<32x128xbf16>, vector<16x128xf32> -> vector<16x128xf32>
    %235 = vector.extract_strided_slice %234 {offsets = [0, 0], sizes = [16, 64], strides = [1, 1]} : vector<16x128xf32> to vector<16x64xf32>
    %236 = vector.extract_strided_slice %234 {offsets = [0, 64], sizes = [16, 64], strides = [1, 1]} : vector<16x128xf32> to vector<16x64xf32>
    %237 = arith.negf %235 : vector<16x64xf32>
    %238 = math.exp %237 : vector<16x64xf32>
    %cst_68 = arith.constant 1.000000e+00 : f32
    %239 = vector.broadcast %cst_68 : f32 to vector<16x64xf32>
    %240 = arith.addf %239, %238 : vector<16x64xf32>
    %241 = arith.divf %239, %240 : vector<16x64xf32>
    %242 = arith.mulf %235, %241 : vector<16x64xf32>
    %243 = arith.mulf %242, %236 : vector<16x64xf32>
    %244 = arith.truncf %243 : vector<16x64xf32> to vector<16x64xbf16>
    %c1_69 = arith.constant 1 : index
    %c0_70 = arith.constant 0 : index
    %c0_71 = arith.constant 0 : index
    %245 = vector.load %arg10[%c1_69, %c0_70, %c0_71] : memref<2x64x32xbf16, #tpu.memory_space<vmem>>, vector<1x64x32xbf16>
    %246 = vector.shape_cast %245 : vector<1x64x32xbf16> to vector<64x32xbf16>
    %cst_72 = arith.constant dense<0.000000e+00> : vector<16x32xf32>
    %247 = tpu.matmul %244, %246, %cst_72 {dimension_numbers = #tpu.dot_dimension_numbers<[1], [0], [0], [1], [0, 0, 1, 1], [], []>} : vector<16x64xbf16>, vector<64x32xbf16>, vector<16x32xf32> -> vector<16x32xf32>
    %248 = arith.addf %216, %247 : vector<16x32xf32>
    %c0_73 = arith.constant 0 : index
    %c0_74 = arith.constant 0 : index
    %249 = vector.load %arg11[%c0_73, %c0_74] : memref<1x32xf32, #tpu.memory_space<vmem>>, vector<1x32xf32>
    %250 = arith.mulf %248, %248 : vector<16x32xf32>
    %cst_75 = arith.constant dense<0.000000e+00> : vector<16xf32>
    %251 = vector.multi_reduction <add>, %250, %cst_75 [1] : vector<16x32xf32> to vector<16xf32>
    %252 = vector.shape_cast %251 : vector<16xf32> to vector<16x1xf32>
    %cst_76 = arith.constant 3.200000e+01 : f32
    %253 = vector.broadcast %cst_76 : f32 to vector<16x1xf32>
    %254 = arith.divf %252, %253 : vector<16x1xf32>
    %cst_77 = arith.constant 9.99999974E-6 : f32
    %255 = vector.broadcast %cst_77 : f32 to vector<16x1xf32>
    %256 = arith.addf %254, %255 : vector<16x1xf32>
    %257 = math.rsqrt %256 : vector<16x1xf32>
    %258 = vector.broadcast %257 : vector<16x1xf32> to vector<16x32xf32>
    %259 = arith.mulf %248, %258 : vector<16x32xf32>
    %260 = vector.broadcast %249 : vector<1x32xf32> to vector<16x32xf32>
    %261 = arith.mulf %259, %260 : vector<16x32xf32>
    %262 = arith.truncf %261 : vector<16x32xf32> to vector<16x32xbf16>
    %c0_78 = arith.constant 0 : index
    %c0_79 = arith.constant 0 : index
    %263 = vector.load %arg12[%c0_78, %c0_79] : memref<32x128xbf16, #tpu.memory_space<vmem>>, vector<32x128xbf16>
    %cst_80 = arith.constant dense<0.000000e+00> : vector<16x128xf32>
    %264 = tpu.matmul %262, %263, %cst_80 {dimension_numbers = #tpu.dot_dimension_numbers<[1], [0], [0], [1], [0, 0, 1, 1], [], []>} : vector<16x32xbf16>, vector<32x128xbf16>, vector<16x128xf32> -> vector<16x128xf32>
    %c0_81 = arith.constant 0 : index
    %c0_82 = arith.constant 0 : index
    %265 = vector.load %arg13[%c0_81, %c0_82] : memref<16x128xf32, #tpu.memory_space<vmem>>, vector<16x128xf32>
    tpu.vector_store %arg13[%c0_81, %c0_82], %264 {strides = array<i32>} : memref<16x128xf32, #tpu.memory_space<vmem>>, vector<16x128xf32>,
    return
  }
}

</mosaic_0001>

<bundles_post_ra>
// kernel: tpu_custom_call.1
= control target key start
LH: loop header
LB: loop body
LE: loop exit
PB: predicated region body
PF: predicated region fallthrough
CT: control target
= control target key end

     0   :  { %18 = vsyncpa [#allocation3], 0  ;;  %s3361_s0 = inlined_call_operand.hbm [shape: f32[16,32], index: 0, kind: input, shape index: {}]   ;;  %s3362_s1 = inlined_call_operand.hbm [shape: f32[16,96], index: 1, kind: input, shape index: {}]   ;;  %s3363_s2 = inlined_call_operand.hbm [shape: f32[16,96], index: 2, kind: input, shape index: {}]   ;;  %s3364_s3 = inlined_call_operand.hbm [shape: f32[16,96], index: 3, kind: input, shape index: {}]   ;;  %s3365_s4 = inlined_call_operand.hbm [shape: f32[16,16], index: 4, kind: input, shape index: {}]   ;;  %s3366_s5 = inlined_call_operand.vmem [shape: f32[2,1,32], index: 5, kind: input, shape index: {}]   ;;  %s3367_s6 = inlined_call_operand.vmem [shape: bf16[2,32,96], index: 6, kind: input, shape index: {}]   ;;  %s3368_s7 = inlined_call_operand.vmem [shape: bf16[2,32,32], index: 7, kind: input, shape index: {}]   ;;  %s3369_s8 = inlined_call_operand.vmem [shape: f32[2,1,32], index: 8, kind: input, shape index: {}]   ;;  %s3370_s9 = inlined_call_operand.vmem [shape: bf16[2,32,128], index: 9, kind: input, shape index: {}]   ;;  %s3371_s10 = inlined_call_operand.vmem [shape: bf16[2,64,32], index: 10, kind: input, shape index: {}]   ;;  %s3372_s11 = inlined_call_operand.vmem [shape: f32[1,32], index: 11, kind: input, shape index: {}]   ;;  %s3373_s12 = inlined_call_operand.hbm [shape: bf16[32,128], index: 12, kind: input, shape index: {}]   ;;  %s3374_s13 = inlined_call_operand.hbm [shape: f32[16,128], index: 13, kind: output, shape index: {}]  }
   0x1   :  { %19 = vsyncpa [#allocation6], 0 }
   0x2   :  { %20 = vsyncpa [#allocation9], 0 }
   0x3   :  { %21 = vsyncpa [#allocation12], 0 }
   0x4   :  { %22 = vsyncpa [#allocation4], 0  ;;  %s2699_s25 = smov [#allocation5]   ;;  %s2700_s27 = smov [#allocation8]  }
   0x5   :  { %s40_s26 = sshll.u32 %s2699_s25, 4  ;;  %s64_s28 = sshll.u32 %s2700_s27, 4  ;;  %s41_s26 = int_to_ptr.vmem [resolvable:$true] %s40_s26  ;;  %s2791_s28 = int_to_ptr.vmem [resolvable:$true] %s64_s28 }
   0x6   :  { %s2535_s14 = scalar_lea.hbm %s3362_s1, 256 }
   0x7   :  { %p2536_p0 = scmp.ne.s32.totalorder %s3362_s1, %s2535_s14  ;;  %p2539_p1 = scmp.lt.u32.totalorder %s2535_s14, %s3362_s1 }
   0x9   :  { %p2541_p2 = pnand %p2539_p1, %p2536_p0 }
   0xb   :  { %2544 = shalt.err (!%p2541_p2)
}
   0xc   :  { %s2545_s19 = scalar_lea.vmem %s41_s26, 256  ;;  %p2550_p4 = scmp.lt.s32.totalorder %s41_s26, %s41_s26 }
   0xd   :  { %p2546_p3 = scmp.ne.s32.totalorder %s41_s26, %s2545_s19  ;;  %p2551_p5 = scmp.lt.s32.totalorder %s2545_s19, %s2545_s19 }
   0xf   :  { %p2552_p6 = por %p2551_p5, %p2550_p4 }
  0x11   :  { %p2553_p7 = pnand %p2552_p6, %p2546_p3 }
  0x13   :  { %2556 = shalt.err (!%p2553_p7)
}
  0x14   :  { %s2701_s20 = smov 128   ;;  %s2702_s21 = smov 8  }
  0x15   :  { %46 = dma.hbm_to_vmem [thread:$0]  %s3362_s1, 256, %s41_s26, [#allocation6], %s2701_s20, %s2701_s20, %s2702_s21  }
  0x16   :  { %s2557_s27 = scalar_lea.hbm %s3364_s3, 256 }
  0x17   :  { %p2558_p8 = scmp.ne.s32.totalorder %s3364_s3, %s2557_s27  ;;  %p2561_p9 = scmp.lt.u32.totalorder %s2557_s27, %s3364_s3 }
  0x19   :  { %p2563_p10 = pnand %p2561_p9, %p2558_p8 }
  0x1b   :  { %2566 = shalt.err (!%p2563_p10)
}
  0x1c   :  { %s2567_s16 = scalar_lea.vmem %s2791_s28, 256  ;;  %p2572_p12 = scmp.lt.s32.totalorder %s2791_s28, %s2791_s28 }
  0x1d   :  { %p2568_p11 = scmp.ne.s32.totalorder %s2791_s28, %s2567_s16  ;;  %p2573_p13 = scmp.lt.s32.totalorder %s2567_s16, %s2567_s16 }
  0x1f   :  { %p2574_p0 = por %p2573_p13, %p2572_p12 }
  0x21   :  { %p2575_p1 = pnand %p2574_p0, %p2568_p11 }
  0x23   :  { %2578 = shalt.err (!%p2575_p1)
}
  0x24   :  { %70 = dma.hbm_to_vmem [thread:$0]  %s3364_s3, 256, %s2791_s28, [#allocation9], %s2701_s20, %s2701_s20, %s2702_s21  }
  0x25   :  { %s2703_s17 = smov [#allocation2]   ;;  %s2704_s19 = smov [#allocation7]  }
  0x26   :  { %s28_s18 = sshll.u32 %s2703_s17, 4  ;;  %s52_s22 = sshll.u32 %s2704_s19, 4  ;;  %s29_s18 = int_to_ptr.vmem [resolvable:$true] %s28_s18  ;;  %s2828_s22 = int_to_ptr.vmem [resolvable:$true] %s52_s22 }
  0x27   :  { %s2579_s25 = scalar_lea.hbm %s3361_s0, 256 }
  0x28   :  { %p2580_p2 = scmp.ne.s32.totalorder %s3361_s0, %s2579_s25  ;;  %p2583_p3 = scmp.lt.u32.totalorder %s2579_s25, %s3361_s0 }
  0x2a   :  { %p2585_p4 = pnand %p2583_p3, %p2580_p2 }
  0x2c   :  { %2588 = shalt.err (!%p2585_p4)
}
  0x2d   :  { %s2589_s3 = scalar_lea.vmem %s29_s18, 256  ;;  %p2594_p6 = scmp.lt.s32.totalorder %s29_s18, %s29_s18 }
  0x2e   :  { %p2590_p5 = scmp.ne.s32.totalorder %s29_s18, %s2589_s3  ;;  %p2595_p7 = scmp.lt.s32.totalorder %s2589_s3, %s2589_s3 }
  0x30   :  { %p2596_p8 = por %p2595_p7, %p2594_p6 }
  0x32   :  { %p2597_p9 = pnand %p2596_p8, %p2590_p5 }
  0x34   :  { %2600 = shalt.err (!%p2597_p9)
}
  0x35   :  { %34 = dma.hbm_to_vmem [thread:$0]  %s3361_s0, 256, %s29_s18, [#allocation3], %s2701_s20, %s2701_s20, %s2702_s21  }
  0x36   :  { %s2601_s26 = scalar_lea.hbm %s3363_s2, 256 }
  0x37   :  { %p2602_p10 = scmp.ne.s32.totalorder %s3363_s2, %s2601_s26  ;;  %p2605_p11 = scmp.lt.u32.totalorder %s2601_s26, %s3363_s2 }
  0x39   :  { %p2607_p12 = pnand %p2605_p11, %p2602_p10 }
  0x3b   :  { %2610 = shalt.err (!%p2607_p12)
}
  0x3c   :  { %s2611_s25 = scalar_lea.vmem %s2828_s22, 256  ;;  %p2616_p0 = scmp.lt.s32.totalorder %s2828_s22, %s2828_s22 }
  0x3d   :  { %p2612_p13 = scmp.ne.s32.totalorder %s2828_s22, %s2611_s25  ;;  %p2617_p1 = scmp.lt.s32.totalorder %s2611_s25, %s2611_s25 }
  0x3f   :  { %p2618_p2 = por %p2617_p1, %p2616_p0 }
  0x41   :  { %p2619_p3 = pnand %p2618_p2, %p2612_p13 }
  0x43   :  { %2622 = shalt.err (!%p2619_p3)
}
  0x44   :  { %58 = dma.hbm_to_vmem [thread:$0]  %s3363_s2, 256, %s2828_s22, [#allocation6], %s2701_s20, %s2701_s20, %s2702_s21  }
  0x45   :  { %s2705_s27 = smov [#allocation10]   ;;  %s2706_s30 = smov [#allocation11]  }
  0x46   :  { %s76_s29 = sshll.u32 %s2705_s27, 4  ;;  %s102_s14 = sshll.u32 %s2706_s30, 4  ;;  %s77_s29 = int_to_ptr.vmem [resolvable:$true] %s76_s29  ;;  %s2865_s14 = int_to_ptr.vmem [resolvable:$true] %s102_s14 }
  0x47   :  { %s2623_s15 = scalar_lea.hbm %s3365_s4, 256 }
  0x48   :  { %p2624_p4 = scmp.ne.s32.totalorder %s3365_s4, %s2623_s15  ;;  %p2627_p5 = scmp.lt.u32.totalorder %s2623_s15, %s3365_s4 }
  0x4a   :  { %p2629_p6 = pnand %p2627_p5, %p2624_p4 }
  0x4c   :  { %2632 = shalt.err (!%p2629_p6)
}
  0x4d   :  { %s2633_s2 = scalar_lea.vmem %s77_s29, 256  ;;  %p2638_p8 = scmp.lt.s32.totalorder %s77_s29, %s77_s29 }
  0x4e   :  { %p2634_p7 = scmp.ne.s32.totalorder %s77_s29, %s2633_s2  ;;  %p2639_p9 = scmp.lt.s32.totalorder %s2633_s2, %s2633_s2 }
  0x50   :  { %p2640_p10 = por %p2639_p9, %p2638_p8 }
  0x52   :  { %p2641_p11 = pnand %p2640_p10, %p2634_p7 }
  0x54   :  { %2644 = shalt.err (!%p2641_p11)
}
  0x55   :  { %82 = dma.hbm_to_vmem [thread:$0]  %s3365_s4, 256, %s77_s29, [#allocation9], %s2701_s20, %s2701_s20, %s2702_s21  }
  0x56   :  { %s2645_s25 = scalar_lea.hbm %s3373_s12, 256 }
  0x57   :  { %p2646_p12 = scmp.ne.s32.totalorder %s3373_s12, %s2645_s25  ;;  %p2649_p13 = scmp.lt.u32.totalorder %s2645_s25, %s3373_s12 }
  0x59   :  { %p2651_p0 = pnand %p2649_p13, %p2646_p12 }
  0x5b   :  { %2654 = shalt.err (!%p2651_p0)
}
  0x5c   :  { %s2655_s3 = scalar_lea.vmem %s2865_s14, 256  ;;  %p2660_p2 = scmp.lt.s32.totalorder %s2865_s14, %s2865_s14 }
  0x5d   :  { %p2656_p1 = scmp.ne.s32.totalorder %s2865_s14, %s2655_s3  ;;  %p2661_p3 = scmp.lt.s32.totalorder %s2655_s3, %s2655_s3 }
  0x5f   :  { %p2662_p4 = por %p2661_p3, %p2660_p2 }
  0x61   :  { %p2663_p5 = pnand %p2662_p4, %p2656_p1 }
  0x63   :  { %2666 = shalt.err (!%p2663_p5)
}
  0x64   :  { %s2707_s4 = smov 64   ;;  %s2708_s29 = smov 4  }
  0x65   :  { %108 = dma.hbm_to_vmem [thread:$0]  %s3373_s12, 256, %s2865_s14, [#allocation12], %s2707_s4, %s2707_s4, %s2708_s29  }
  0x66   :  { %2689 = dma.done.wait [#allocation3], 256  }
  0x67   :  { %2690 = vsyncadd [#allocation3], 4294967040 }
  0x68   :  { %2691 = dma.done.wait [#allocation6], 512  }
  0x69   :  { %2692 = vsyncadd [#allocation6], 4294966784 }
  0x6a   :  { %2693 = dma.done.wait [#allocation9], 512  }
  0x6b   :  { %2694 = vsyncadd [#allocation9], 4294966784 }
  0x6c   :  { %2695 = dma.done.wait [#allocation12], 256  }
  0x6d   :  { %2696 = vsyncadd [#allocation12], 4294967040  ;;  %v2902_v0 = vld [vmem:[#allocation2] sm:$0xff]  ;;  %vm141_vm0 = vcmask 261120   ;;  %v2904_v1 = vld [vmem:[#allocation2 + $0x8] sm:$0xff]  ;;  %v2709_v7 = vmov 0.0  }
  0x6e   :  { %v139_v2 = vmul.f32 %v2902_v0, %v2902_v0  ;;  %v140_v3 = vmul.f32 %v2904_v1, %v2904_v1  ;;  %v2413_v6 = vld [vmem:[%s3367_s6] sm:$0xff]   ;;  %2185 = vmatprep.subr.bf16.mxu0 %v2709_v7  ;;  %vm2710_vm1 = vmmov 0   ;;  %v2414_v8 = vld [vmem:[%s3367_s6 + $0x8] sm:$0xff]   ;;  %2193 = vmatprep.subr.bf16.mxu1 %v2709_v7  ;;  %s2711_s2 = smov 92   ;;  %s2712_s22 = smov 124   ;;  %vm242_vm2 = vcmask 752640  }
  0x6f   :  { %2189 = vmatprep.mubr.msk.bf16.mxu0 %vm2710_vm1, %v2709_v7  ;;  %2186 = vmatpush3.bf16.msra.mxu0 %v2413_v6  ;;  %v2044_v18 = vld [vmem:[%s3366_s5] ss:$0 sm:$0xff]  ;;  %s2713_s19 = smov 36   ;;  %vm261_vm3 = vcmask 31744   ;;  %v2945_v35 = vld [vmem:[#allocation7 + $0x8] sm:$0xff]  ;;  %v2948_v38 = vld [vmem:[#allocation5] sm:$0xff] }
  0x70   :  { %v142_v4 = vsel %vm141_vm0, %v139_v2, 0.0  ;;  %v145_v5 = vsel %vm141_vm0, %v140_v3, 0.0  ;;  %2187 = vmatprep.subr.bf16.mxu0 %v2709_v7  ;;  %2195 = vmatprep.mubr.msk.bf16.mxu1 %vm2710_vm1, %v2709_v7  ;;  %v2942_v33 = vld [vmem:[#allocation7] sm:$0xff]  ;;  %v2950_v39 = vld [vmem:[#allocation8] sm:$0xff]  ;;  %v2953_v41 = vld [vmem:[#allocation5 + $0x8] sm:$0xff]  ;;  %s2714_s23 = smov 112  }
  0x71   :  { %143 = vadd.xlane.f32.xlu0 %v142_v4  ;;  %v2957_v44 = vld [vmem:[#allocation8 + $0x8] sm:$0xff]  ;;  %s2715_s24 = smov 120   ;;  %s2716_s25 = smov 96   ;;  %vm278_vm4 = vcmask 64512   ;;  %vm473_vm5 = vcmask 130048   ;;  %vm782_vm6 = vcmask 195584  }
  0x72   :  { %s2717_s0 = smov 104   ;;  %s2718_s28 = smov 16   ;;  %vm991_vm7 = vcmask 523264  }
  0x73   :  { %2188 = vmatpush3.bf16.msra.mxu0 %v2414_v8  ;;  %v3012_v8 = vld [vmem:[#allocation10 + $0x8] sm:$0xff]  ;;  %s2719_s15 = smov 24   ;;  %s2720_s1 = smov [#allocation13]  }
  0x74   :  { %2199 = vmatprep.subr.bf16.mxu0 %v2709_v7  ;;  %s2029_s26 = sshll.u32 %s2720_s1, 4  ;;  %s2030_s26 = int_to_ptr.vmem [resolvable:$true] %s2029_s26 }
  0x75   :  { %146 = vadd.xlane.f32.xlu0 %v145_v5  ;;  %v3010_v5 = vld [vmem:[#allocation10] sm:$0xff]  ;;  %s2667_s17 = scalar_lea.vmem %s2030_s26, 256  ;;  %p2672_p7 = scmp.lt.s32.totalorder %s2030_s26, %s2030_s26 }
  0x76   :  { %p2668_p6 = scmp.ne.s32.totalorder %s2030_s26, %s2667_s17  ;;  %p2673_p8 = scmp.lt.s32.totalorder %s2667_s17, %s2667_s17 }
  0x78   :  { %p2674_p9 = por %p2673_p8, %p2672_p7 }
  0x7a   :  { %p2675_p10 = pnand %p2674_p9, %p2668_p6 }
  0xfe   :  { %v144_v9 = vpop.xlane.xlu0 %143 }
  0xff   :  { %v149_v10 = vmul.f32 0.03125, %v144_v9 }
 0x101   :  { %v151_v11 = vadd.f32 1e-05, %v149_v10 }
 0x102   :  { %v147_v12 = vpop.xlane.xlu0 %146 }
 0x103   :  { %2435 = vrsqrt.f32 %v151_v11  ;;  %v150_v13 = vmul.f32 0.03125, %v147_v12 }
 0x105   :  { %v152_v14 = vadd.f32 1e-05, %v150_v13 }
 0x107   :  { %2437 = vrsqrt.f32 %v152_v14 }
 0x10d   :  { %v2436_v15 = vpop.eup %2435 }
 0x10e   :  { %v155_v16 = vmul.f32 %v2436_v15, %v2902_v0 }
 0x110   :  { %v163_v20 = vmul.f32 %v2044_v18, %v155_v16 }
 0x111   :  { %v2438_v17 = vpop.eup %2437 }
 0x112   :  { %v156_v19 = vmul.f32 %v2438_v17, %v2904_v1 }
 0x114   :  { %v164_v21 = vmul.f32 %v2044_v18, %v156_v19 }
 0x116   :  { %v165_v22 = vpack.c.bf16 %v164_v21, %v163_v20 }
 0x118   :  { %2190 = vmatmul.mubr.msk.bf16.vlgmr.msra.gmra.mrb[0].mxu0 %vm141_vm0, %v165_v22 }
 0x119   :  { %2201 = vmatprep.mubr.msk.bf16.mxu0 %vm2710_vm1, %v2709_v7 }
 0x1eb   :  { %v219_v23 = vpop.f32.mrb[0].mxu0 }
 0x1ec   :  { %236 = vrot.lane.b32.xlu0 %v219_v23, %s2711_s2  ;;  %230 = vrot.lane.b32.xlu1 %v219_v23, %s2712_s22  ;;  %v2191_v24 = vpop.f32.mrb[1].mxu0  ;;  %v226_v45 = vmul.f32 %v219_v23, %v2948_v38 }
 0x1ed   :  { %v222_v25 = vpop.f32.mrb[2].mxu0 }
 0x1ee   :  { %v2192_v26 = vpop.f32.mrb[3].mxu0  ;;  %v227_v47 = vmul.f32 %v222_v25, %v2953_v41 }
 0x1f0   :  { %249 = vrot.lane.b32.xlu1 %v219_v23, %s2713_s19 }
 0x1f4   :  { %255 = vrot.lane.b32.xlu1 %v219_v23, %s2708_s29 }
 0x1f8   :  { %232 = vrot.lane.b32.xlu1 %v222_v25, %s2712_s22 }
 0x1fc   :  { %238 = vrot.lane.b32.xlu1 %v222_v25, %s2711_s2 }
 0x200   :  { %251 = vrot.lane.b32.xlu1 %v222_v25, %s2713_s19 }
 0x204   :  { %257 = vrot.lane.b32.xlu1 %v222_v25, %s2708_s29 }
 0x25e   :  { %v231_v27 = vpop.permute.xlu1 %230  ;;  %v237_v31 = vpop.permute.xlu0 %236 }
 0x25f   :  { %v243_v34 = vsel %vm242_vm2, %v231_v27, %v237_v31 }
 0x260   :  { %v245_v42 = vmul.f32 %v243_v34, %v2942_v33 }
 0x262   :  { %v250_v28 = vpop.permute.xlu1 %249  ;;  %v247_v50 = vadd.f32 %v245_v42, %v226_v45 }
 0x266   :  { %v256_v29 = vpop.permute.xlu1 %255 }
 0x267   :  { %v262_v40 = vsel %vm261_vm3, %v250_v28, %v256_v29 }
 0x268   :  { %v264_v46 = vmul.f32 %v262_v40, %v2950_v39 }
 0x26a   :  { %v233_v30 = vpop.permute.xlu1 %232  ;;  %v266_v53 = vadd.f32 %v264_v46, %v247_v50 }
 0x26e   :  { %v239_v32 = vpop.permute.xlu1 %238 }
 0x26f   :  { %v244_v36 = vsel %vm242_vm2, %v233_v30, %v239_v32 }
 0x270   :  { %v246_v43 = vmul.f32 %v244_v36, %v2945_v35 }
 0x272   :  { %v252_v37 = vpop.permute.xlu1 %251  ;;  %v248_v51 = vadd.f32 %v246_v43, %v227_v47 }
 0x276   :  { %v258_v48 = vpop.permute.xlu1 %257 }
 0x277   :  { %v263_v49 = vsel %vm261_vm3, %v252_v37, %v258_v48 }
 0x278   :  { %v265_v52 = vmul.f32 %v263_v49, %v2957_v44 }
 0x27a   :  { %v267_v54 = vadd.f32 %v265_v52, %v248_v51 }
 0x27c   :  { %v2964_v55 = vpack.c.bf16 %v267_v54, %v266_v53 }
 0x27e   :  { %272 = vrot.lane.b32.xlu0 %v2964_v55, %s2714_s23  ;;  %270 = vrot.lane.b32.xlu1 %v2964_v55, %s2715_s24 }
 0x282   :  { %276 = vrot.lane.b32.xlu0 %v2964_v55, %s2716_s25  ;;  %274 = vrot.lane.b32.xlu1 %v2964_v55, %s2717_s0 }
 0x2f0   :  { %v2974_v56 = vpop.permute.xlu0 %272  ;;  %v2976_v57 = vpop.permute.xlu1 %270 }
 0x2f1   :  { %375 = vrot.lane.b32.xlu0 %v2974_v56, %s2716_s25  ;;  %326 = vrot.lane.b32.xlu1 %v2976_v57, %s2716_s25 }
 0x2f4   :  { %v277_v58 = vpop.permute.xlu0 %276  ;;  %v2982_v59 = vpop.permute.xlu1 %274 }
 0x2f5   :  { %424 = vrot.lane.b32.xlu1 %v2982_v59, %s2716_s25  ;;  %v283_v60 = vsel %vm278_vm4, %v277_v58, 0 }
 0x2f6   :  { %2194 = vmatpush3.bf16.xpose.msra.mxu1 %v283_v60 }
 0x2f7   :  { %2205 = vmatprep.subr.bf16.mxu1 %v2709_v7 }
 0x2fd   :  { %2196 = vmatmul.mubr.msk.bf16.vlgmr.msra.gmra.mrb[0].mxu1 %vm278_vm4, %v2964_v55 }
 0x2fe   :  { %2207 = vmatprep.mubr.msk.bf16.mxu1 %vm2710_vm1, %v2709_v7 }
 0x363   :  { %v376_v61 = vpop.permute.xlu0 %375  ;;  %v327_v62 = vpop.permute.xlu1 %326 }
 0x364   :  { %v381_v63 = vsel %vm278_vm4, %v376_v61, 0  ;;  %v332_v2 = vsel %vm278_vm4, %v327_v62, 0 }
 0x365   :  { %2200 = vmatpush3.bf16.xpose.msra.mxu0 %v332_v2  ;;  %2206 = vmatpush3.bf16.xpose.msra.mxu1 %v381_v63 }
 0x366   :  { %2211 = vmatprep.subr.bf16.mxu0 %v2709_v7  ;;  %2217 = vmatprep.subr.bf16.mxu1 %v2709_v7 }
 0x367   :  { %v425_v3 = vpop.permute.xlu1 %424 }
 0x368   :  { %v430_v4 = vsel %vm278_vm4, %v425_v3, 0 }
 0x36c   :  { %2202 = vmatmul.mubr.msk.bf16.vlgmr.msra.gmra.mrb[4].mxu0 %vm278_vm4, %v2976_v57  ;;  %2208 = vmatmul.mubr.msk.bf16.vlgmr.msra.gmra.mrb[4].mxu1 %vm278_vm4, %v2974_v56 }
 0x36d   :  { %2212 = vmatpush3.bf16.xpose.msra.mxu0 %v430_v4  ;;  %2213 = vmatprep.mubr.msk.bf16.mxu0 %vm2710_vm1, %v2709_v7 }
 0x36e   :  { %2219 = vmatprep.mubr.msk.bf16.mxu1 %vm2710_vm1, %v2709_v7  ;;  %2223 = vmatprep.subr.bf16.mxu0 %v2709_v7 }
 0x374   :  { %2214 = vmatmul.mubr.msk.bf16.vlgmr.msra.gmra.mrb[8].mxu0 %vm278_vm4, %v2982_v59 }
 0x375   :  { %2225 = vmatprep.mubr.msk.bf16.mxu0 %vm2710_vm1, %v2709_v7 }
 0x3d0   :  { %v319_v6 = vpop.f32.mrb[0].mxu1 }
 0x3d1   :  { %v320_v9 = vadd.f32 %v319_v6, %v3010_v5  ;;  %v2197_v10 = vpop.f32.mrb[1].mxu1 }
 0x3d2   :  { %v322_v11 = vpop.f32.mrb[2].mxu1 }
 0x3d3   :  { %v323_v12 = vadd.f32 %v322_v11, %v3012_v8  ;;  %v2198_v13 = vpop.f32.mrb[3].mxu1  ;;  %v474_v14 = vsel %vm473_vm5, %v320_v9, -inf }
 0x3d4   :  { %475 = vmax.xlane.f32.xlu0 %v474_v14 }
 0x3d5   :  { %v477_v15 = vsel %vm473_vm5, %v323_v12, -inf }
 0x3d6   :  { %478 = vmax.xlane.f32.xlu1 %v477_v15 }
 0x43f   :  { %v368_v16 = vpop.f32.mrb[4].mxu0  ;;  %v417_v17 = vpop.f32.mrb[4].mxu1 }
 0x440   :  { %v369_v18 = vadd.f32 %v368_v16, %v3010_v5  ;;  %v418_v19 = vadd.f32 %v417_v17, %v3010_v5  ;;  %v2203_v20 = vpop.f32.mrb[5].mxu0  ;;  %v2209_v21 = vpop.f32.mrb[5].mxu1 }
 0x441   :  { %v371_v22 = vpop.f32.mrb[6].mxu0  ;;  %v420_v23 = vpop.f32.mrb[6].mxu1 }
 0x442   :  { %v372_v24 = vadd.f32 %v371_v22, %v3012_v8  ;;  %v2204_v25 = vpop.f32.mrb[7].mxu0  ;;  %v2210_v26 = vpop.f32.mrb[7].mxu1  ;;  %v486_v27 = vsel %vm473_vm5, %v418_v19, -inf  ;;  %v480_v28 = vsel %vm473_vm5, %v369_v18, -inf  ;;  %v421_v29 = vadd.f32 %v420_v23, %v3012_v8 }
 0x443   :  { %487 = vmax.xlane.f32.xlu1 %v486_v27  ;;  %481 = vmax.xlane.f32.xlu0 %v480_v28 }
 0x444   :  { %v483_v30 = vsel %vm473_vm5, %v372_v24, -inf  ;;  %v489_v42 = vsel %vm473_vm5, %v421_v29, -inf }
 0x447   :  { %484 = vmax.xlane.f32.xlu0 %v483_v30  ;;  %v466_v31 = vpop.f32.mrb[8].mxu0 }
 0x448   :  { %v467_v32 = vadd.f32 %v466_v31, %v3010_v5  ;;  %v2215_v34 = vpop.f32.mrb[9].mxu0 }
 0x449   :  { %v469_v36 = vpop.f32.mrb[10].mxu0 }
 0x44a   :  { %v470_v37 = vadd.f32 %v469_v36, %v3012_v8  ;;  %v2216_v40 = vpop.f32.mrb[11].mxu0  ;;  %v492_v43 = vsel %vm473_vm5, %v467_v32, -inf }
 0x44b   :  { %490 = vmax.xlane.f32.xlu0 %v489_v42  ;;  %493 = vmax.xlane.f32.xlu1 %v492_v43 }
 0x44c   :  { %v495_v45 = vsel %vm473_vm5, %v470_v37, -inf }
 0x44f   :  { %496 = vmax.xlane.f32.xlu0 %v495_v45 }
 0x45c   :  { %566 = vrot.lane.b32.xlu1 %v2964_v55, %s2707_s4 }
 0x461   :  { %v476_v49 = vpop.xlane.xlu0 %475 }
 0x462   :  { %v498_v50 = vsub.f32 %v320_v9, %v476_v49 }
 0x463   :  { %v479_v46 = vpop.xlane.xlu1 %478 }
 0x464   :  { %v499_v47 = vsub.f32 %v323_v12, %v479_v46  ;;  %v506_v51 = vmul.f32 1.442695, %v498_v50 }
 0x466   :  { %v508_v48 = vmul.f32 1.442695, %v499_v47 }
 0x468   :  { %2439 = vpow2.f32 %v508_v48 }
 0x469   :  { %2441 = vpow2.f32 %v506_v51 }
 0x472   :  { %v2440_v52 = vpop.eup %2439 }
 0x473   :  { %v525_v53 = vsel %vm473_vm5, %v2440_v52, 0.0  ;;  %v2442_v54 = vpop.eup %2441 }
 0x474   :  { %526 = vadd.xlane.f32.xlu0 %v525_v53  ;;  %v522_v58 = vsel %vm473_vm5, %v2442_v54, 0.0 }
 0x480   :  { %523 = vadd.xlane.f32.xlu1 %v522_v58 }
 0x4d0   :  { %v482_v60 = vpop.xlane.xlu0 %481  ;;  %v488_v61 = vpop.xlane.xlu1 %487 }
 0x4d1   :  { %v500_v62 = vsub.f32 %v369_v18, %v482_v60  ;;  %v502_v55 = vsub.f32 %v418_v19, %v488_v61 }
 0x4d3   :  { %v510_v63 = vmul.f32 1.442695, %v500_v62  ;;  %v514_v2 = vmul.f32 1.442695, %v502_v55 }
 0x4d4   :  { %v485_v3 = vpop.xlane.xlu0 %484 }
 0x4d5   :  { %2443 = vpow2.f32 %v510_v63  ;;  %v501_v4 = vsub.f32 %v372_v24, %v485_v3 }
 0x4d6   :  { %2445 = vpow2.f32 %v514_v2 }
 0x4d7   :  { %v512_v6 = vmul.f32 1.442695, %v501_v4 }
 0x4d8   :  { %v491_v9 = vpop.xlane.xlu0 %490  ;;  %v494_v10 = vpop.xlane.xlu1 %493 }
 0x4d9   :  { %2447 = vpow2.f32 %v512_v6  ;;  %v503_v11 = vsub.f32 %v421_v29, %v491_v9  ;;  %v504_v12 = vsub.f32 %v467_v32, %v494_v10 }
 0x4db   :  { %v516_v13 = vmul.f32 1.442695, %v503_v11  ;;  %v518_v14 = vmul.f32 1.442695, %v504_v12 }
 0x4dc   :  { %v497_v15 = vpop.xlane.xlu0 %496  ;;  %v567_v16 = vpop.permute.xlu1 %566 }
 0x4dd   :  { %2449 = vpow2.f32 %v516_v13  ;;  %v505_v17 = vsub.f32 %v470_v37, %v497_v15  ;;  %2218 = vmatpush3.bf16.msra.mxu1 %v567_v16  ;;  %v2415_v13 = vld [vmem:[%s3368_s7] sm:$0xff]   ;;  %v2416_v16 = vld [vmem:[%s3368_s7 + $0x8] sm:$0xff]  }
 0x4de   :  { %2451 = vpow2.f32 %v518_v14  ;;  %2229 = vmatprep.subr.bf16.mxu1 %v2709_v7 }
 0x4df   :  { %v2444_v18 = vpop.eup %2443  ;;  %v520_v19 = vmul.f32 1.442695, %v505_v17 }
 0x4e0   :  { %v528_v20 = vsel %vm473_vm5, %v2444_v18, 0.0  ;;  %v2446_v21 = vpop.eup %2445 }
 0x4e1   :  { %2453 = vpow2.f32 %v520_v19  ;;  %529 = vadd.xlane.f32.xlu1 %v528_v20  ;;  %v534_v24 = vsel %vm473_vm5, %v2446_v21, 0.0 }
 0x4e3   :  { %v2448_v22 = vpop.eup %2447 }
 0x4e4   :  { %v531_v23 = vsel %vm473_vm5, %v2448_v22, 0.0 }
 0x4e5   :  { %532 = vadd.xlane.f32.xlu0 %v531_v23  ;;  %535 = vadd.xlane.f32.xlu1 %v534_v24 }
 0x4e7   :  { %v2450_v25 = vpop.eup %2449 }
 0x4e8   :  { %v2452_v26 = vpop.eup %2451  ;;  %v537_v27 = vsel %vm473_vm5, %v2450_v25, 0.0 }
 0x4e9   :  { %538 = vadd.xlane.f32.xlu0 %v537_v27  ;;  %v540_v28 = vsel %vm473_vm5, %v2452_v26, 0.0 }
 0x4ea   :  { %541 = vadd.xlane.f32.xlu1 %v540_v28 }
 0x4eb   :  { %v2454_v29 = vpop.eup %2453 }
 0x4ec   :  { %v543_v30 = vsel %vm473_vm5, %v2454_v29, 0.0 }
 0x4ed   :  { %544 = vadd.xlane.f32.xlu0 %v543_v30 }
 0x4fb   :  { %660 = vrot.lane.b32.xlu1 %v2974_v56, %s2707_s4 }
 0x4ff   :  { %707 = vrot.lane.b32.xlu1 %v2982_v59, %s2707_s4 }
 0x501   :  { %v527_v31 = vpop.xlane.xlu0 %526 }
 0x502   :  { %2455 = vrcp.f32 %v527_v31 }
 0x503   :  { %613 = vrot.lane.b32.xlu0 %v2976_v57, %s2707_s4 }
 0x50c   :  { %v2456_v34 = vpop.eup %2455 }
 0x50d   :  { %v524_v32 = vpop.xlane.xlu1 %523  ;;  %v555_v37 = vmul.f32 %v2456_v34, %v2440_v52 }
 0x50e   :  { %2457 = vrcp.f32 %v524_v32 }
 0x518   :  { %v2458_v36 = vpop.eup %2457 }
 0x519   :  { %v554_v40 = vmul.f32 %v2458_v36, %v2442_v54 }
 0x51b   :  { %v562_v42 = vpack.c.bf16 %v555_v37, %v554_v40 }
 0x51d   :  { %2220 = vmatmul.mubr.msk.bf16.vlgmr.msra.gmra.mrb[8].mxu1 %vm473_vm5, %v562_v42 }
 0x51e   :  { %2231 = vmatprep.mubr.msk.bf16.mxu1 %vm2710_vm1, %v2709_v7 }
 0x56e   :  { %v530_v56 = vpop.xlane.xlu1 %529 }
 0x56f   :  { %2459 = vrcp.f32 %v530_v56 }
 0x572   :  { %v533_v59 = vpop.xlane.xlu0 %532  ;;  %v536_v43 = vpop.xlane.xlu1 %535 }
 0x573   :  { %2461 = vrcp.f32 %v533_v59 }
 0x574   :  { %2463 = vrcp.f32 %v536_v43 }
 0x576   :  { %v539_v57 = vpop.xlane.xlu0 %538 }
 0x577   :  { %2465 = vrcp.f32 %v539_v57  ;;  %v542_v45 = vpop.xlane.xlu1 %541 }
 0x578   :  { %2467 = vrcp.f32 %v542_v45 }
 0x579   :  { %v2460_v47 = vpop.eup %2459 }
 0x57a   :  { %v545_v46 = vpop.xlane.xlu0 %544  ;;  %v556_v50 = vmul.f32 %v2460_v47, %v2444_v18 }
 0x57b   :  { %2469 = vrcp.f32 %v545_v46  ;;  %v661_v48 = vpop.permute.xlu1 %660 }
 0x57c   :  { %2230 = vmatpush3.bf16.msra.mxu1 %v661_v48 }
 0x57d   :  { %v2462_v49 = vpop.eup %2461  ;;  %2241 = vmatprep.subr.bf16.mxu1 %v2709_v7 }
 0x57e   :  { %v557_v51 = vmul.f32 %v2462_v49, %v2448_v22  ;;  %v614_v52 = vpop.permute.xlu0 %613  ;;  %v2464_v53 = vpop.eup %2463 }
 0x57f   :  { %2224 = vmatpush3.bf16.msra.mxu0 %v614_v52  ;;  %v558_v60 = vmul.f32 %v2464_v53, %v2446_v21  ;;  %v708_v62 = vpop.permute.xlu1 %707 }
 0x580   :  { %v563_v54 = vpack.c.bf16 %v557_v51, %v556_v50  ;;  %2235 = vmatprep.subr.bf16.mxu0 %v2709_v7 }
 0x581   :  { %v2466_v58 = vpop.eup %2465 }
 0x582   :  { %v559_v61 = vmul.f32 %v2466_v58, %v2450_v25  ;;  %2226 = vmatmul.mubr.msk.bf16.vlgmr.msra.gmra.mrb[12].mxu0 %vm473_vm5, %v563_v54  ;;  %v2468_v55 = vpop.eup %2467 }
 0x583   :  { %2236 = vmatpush3.bf16.msra.mxu0 %v708_v62  ;;  %2237 = vmatprep.mubr.msk.bf16.mxu0 %vm2710_vm1, %v2709_v7  ;;  %v560_v3 = vmul.f32 %v2468_v55, %v2452_v26 }
 0x584   :  { %v564_v63 = vpack.c.bf16 %v559_v61, %v558_v60  ;;  %2249 = vmatprep.subr.bf16.mxu0 %v2709_v7 }
 0x585   :  { %v2470_v2 = vpop.eup %2469 }
 0x586   :  { %v561_v4 = vmul.f32 %v2470_v2, %v2454_v29  ;;  %2232 = vmatmul.mubr.msk.bf16.vlgmr.msra.gmra.mrb[12].mxu1 %vm473_vm5, %v564_v63 }
 0x587   :  { %2245 = vmatprep.mubr.msk.bf16.mxu1 %vm2710_vm1, %v2709_v7  ;;  %2242 = vmatpush3.bf16.msra.mxu1 %v2415_v13 }
 0x588   :  { %v565_v6 = vpack.c.bf16 %v561_v4, %v560_v3  ;;  %2243 = vmatprep.subr.bf16.mxu1 %v2709_v7 }
 0x58a   :  { %2238 = vmatmul.mubr.msk.bf16.vlgmr.msra.gmra.mrb[16].mxu0 %vm473_vm5, %v565_v6 }
 0x58b   :  { %2253 = vmatprep.mubr.msk.bf16.mxu0 %vm2710_vm1, %v2709_v7  ;;  %2244 = vmatpush3.bf16.msra.mxu1 %v2416_v16 }
 0x58c   :  { %2257 = vmatprep.subr.bf16.mxu1 %v2709_v7 }
 0x5f0   :  { %v606_v9 = vpop.f32.mrb[8].mxu1 }
 0x5f1   :  { %v2221_v10 = vpop.f32.mrb[9].mxu1 }
 0x5f2   :  { %v609_v11 = vpop.f32.mrb[10].mxu1 }
 0x5f3   :  { %v2222_v12 = vpop.f32.mrb[11].mxu1 }
 0x5f4   :  { %v2059_v12 = vld [vmem:[%s3369_s8] ss:$0 sm:$0xff] }
 0x655   :  { %v653_v14 = vpop.f32.mrb[12].mxu0 }
 0x656   :  { %v2227_v15 = vpop.f32.mrb[13].mxu0 }
 0x657   :  { %v656_v17 = vpop.f32.mrb[14].mxu0 }
 0x658   :  { %v2383_v18 = vpack.i.bf16 %v656_v17, %v653_v14  ;;  %v2228_v19 = vpop.f32.mrb[15].mxu0  ;;  %v2419_v17 = vld [vmem:[%s3371_s10] sm:$0xff]  }
 0x659   :  { %v700_v20 = vpop.f32.mrb[12].mxu1  ;;  %v2421_v19 = vld [vmem:[%s3371_s10 + $0x10] sm:$0xff]  }
 0x65a   :  { %2384 = vrot.lane.b32.xlu0 %v2383_v18, %s2702_s21  ;;  %v2233_v21 = vpop.f32.mrb[13].mxu1  ;;  %v2420_v18 = vld [vmem:[%s3371_s10 + $0x8] sm:$0xff]  }
 0x65b   :  { %v703_v22 = vpop.f32.mrb[14].mxu1 }
 0x65c   :  { %v2388_v23 = vpack.i.bf16 %v703_v22, %v700_v20  ;;  %v2234_v24 = vpop.f32.mrb[15].mxu1  ;;  %v2422_v20 = vld [vmem:[%s3371_s10 + $0x18] sm:$0xff]  }
 0x65d   :  { %v747_v25 = vpop.f32.mrb[16].mxu0 }
 0x65e   :  { %2389 = vrot.lane.b32.xlu1 %v2388_v23, %s2718_s28  ;;  %v2239_v26 = vpop.f32.mrb[17].mxu0 }
 0x65f   :  { %v750_v27 = vpop.f32.mrb[18].mxu0 }
 0x660   :  { %v2393_v28 = vpack.i.bf16 %v750_v27, %v747_v25  ;;  %v2240_v29 = vpop.f32.mrb[19].mxu0 }
 0x662   :  { %2394 = vrot.lane.b32.xlu0 %v2393_v28, %s2719_s15 }
 0x6cc   :  { %v2385_v30 = vpop.permute.xlu0 %2384 }
 0x6cd   :  { %v2387_v32 = vunpack.i.h.bf16 %v2385_v30  ;;  %v2386_v34 = vunpack.i.l.bf16 %v2385_v30 }
 0x6cf   :  { %v779_v42 = vsel %vm278_vm4, %v609_v11, %v2387_v32  ;;  %v778_v56 = vsel %vm278_vm4, %v606_v9, %v2386_v34 }
 0x6d0   :  { %v2390_v31 = vpop.permute.xlu1 %2389 }
 0x6d1   :  { %v2392_v36 = vunpack.i.h.bf16 %v2390_v31  ;;  %v2391_v37 = vunpack.i.l.bf16 %v2390_v31 }
 0x6d3   :  { %v781_v57 = vsel %vm473_vm5, %v779_v42, %v2392_v36  ;;  %v780_v45 = vsel %vm473_vm5, %v778_v56, %v2391_v37 }
 0x6d4   :  { %v2395_v40 = vpop.permute.xlu0 %2394 }
 0x6d5   :  { %v2397_v59 = vunpack.i.h.bf16 %v2395_v40  ;;  %v2396_v43 = vunpack.i.l.bf16 %v2395_v40 }
 0x6d7   :  { %v783_v46 = vsel %vm782_vm6, %v780_v45, %v2396_v43  ;;  %v784_v47 = vsel %vm782_vm6, %v781_v57, %v2397_v59 }
 0x6d8   :  { %v785_v48 = vpack.c.bf16 %v784_v47, %v783_v46 }
 0x6da   :  { %2246 = vmatmul.mubr.msk.bf16.vlgmr.msra.gmra.mrb[16].mxu1 %vm141_vm0, %v785_v48 }
 0x6db   :  { %2265 = vmatprep.mubr.msk.bf16.mxu1 %vm2710_vm1, %v2709_v7  ;;  %2258 = vmatpush3.bf16.msra.mxu1 %v2419_v17 }
 0x6dc   :  { %2259 = vmatprep.subr.bf16.mxu1 %v2709_v7 }
 0x6df   :  { %2260 = vmatpush3.bf16.msra.mxu1 %v2420_v18 }
 0x6e0   :  { %2261 = vmatprep.subr.bf16.mxu1 %v2709_v7 }
 0x6e3   :  { %2262 = vmatpush3.bf16.msra.mxu1 %v2421_v19 }
 0x6e4   :  { %2263 = vmatprep.subr.bf16.mxu1 %v2709_v7 }
 0x6e7   :  { %2264 = vmatpush3.bf16.msra.mxu1 %v2422_v20 }
 0x6e8   :  { %2283 = vmatprep.subr.bf16.mxu1 %v2709_v7 }
 0x7ad   :  { %v839_v49 = vpop.f32.mrb[16].mxu1 }
 0x7ae   :  { %v3083_v50 = vadd.f32 %v839_v49, %v2902_v0  ;;  %v2247_v51 = vpop.f32.mrb[17].mxu1  ;;  %v2417_v0 = vld [vmem:[%s3370_s9] sm:$0xff]  }
 0x7af   :  { %v842_v52 = vpop.f32.mrb[18].mxu1  ;;  %2250 = vmatpush3.bf16.msra.mxu0 %v2417_v0 }
 0x7b0   :  { %v3086_v53 = vadd.f32 %v842_v52, %v2904_v1  ;;  %v2248_v54 = vpop.f32.mrb[19].mxu1  ;;  %v849_v58 = vmul.f32 %v3083_v50, %v3083_v50  ;;  %v2418_v1 = vld [vmem:[%s3370_s9 + $0x8] sm:$0xff]   ;;  %2251 = vmatprep.subr.bf16.mxu0 %v2709_v7 }
 0x7b2   :  { %v851_v60 = vsel %vm141_vm0, %v849_v58, 0.0  ;;  %v850_v61 = vmul.f32 %v3086_v53, %v3086_v53 }
 0x7b3   :  { %852 = vadd.xlane.f32.xlu1 %v851_v60  ;;  %2252 = vmatpush3.bf16.msra.mxu0 %v2418_v1 }
 0x7b4   :  { %v854_v62 = vsel %vm141_vm0, %v850_v61, 0.0  ;;  %2269 = vmatprep.subr.bf16.mxu0 %v2709_v7 }
 0x7b5   :  { %855 = vadd.xlane.f32.xlu0 %v854_v62 }
 0x840   :  { %v853_v55 = vpop.xlane.xlu1 %852 }
 0x841   :  { %v857_v63 = vmul.f32 0.03125, %v853_v55 }
 0x842   :  { %v856_v2 = vpop.xlane.xlu0 %855 }
 0x843   :  { %v859_v3 = vadd.f32 1e-05, %v857_v63  ;;  %v858_v4 = vmul.f32 0.03125, %v856_v2 }
 0x845   :  { %2471 = vrsqrt.f32 %v859_v3  ;;  %v860_v6 = vadd.f32 1e-05, %v858_v4  ;;  %v2071_v3 = vld [vmem:[%s3366_s5 + $0x1] ss:$0 sm:$0xff] }
 0x847   :  { %2473 = vrsqrt.f32 %v860_v6 }
 0x84f   :  { %v2472_v9 = vpop.eup %2471 }
 0x850   :  { %v863_v10 = vmul.f32 %v2472_v9, %v3083_v50 }
 0x851   :  { %v2474_v11 = vpop.eup %2473 }
 0x852   :  { %v864_v13 = vmul.f32 %v2474_v11, %v3086_v53  ;;  %v871_v14 = vmul.f32 %v2059_v12, %v863_v10 }
 0x854   :  { %v872_v15 = vmul.f32 %v2059_v12, %v864_v13 }
 0x856   :  { %v873_v16 = vpack.c.bf16 %v872_v15, %v871_v14 }
 0x858   :  { %2254 = vmatmul.mubr.msk.bf16.vlgmr.msra.gmra.mrb[20].mxu0 %vm141_vm0, %v873_v16 }
 0x859   :  { %2273 = vmatprep.mubr.msk.bf16.mxu0 %vm2710_vm1, %v2709_v7 }
 0x92b   :  { %v927_v21 = vpop.f32.mrb[20].mxu0 }
 0x92c   :  { %950 = vrot.lane.b32.xlu0 %v927_v21, %s2707_s4  ;;  %v2255_v22 = vpop.f32.mrb[21].mxu0  ;;  %v2063_v25 = vmul.f32 -1.442695, %v927_v21 }
 0x92d   :  { %v930_v23 = vpop.f32.mrb[22].mxu0 }
 0x92e   :  { %952 = vrot.lane.b32.xlu1 %v930_v23, %s2707_s4  ;;  %v2256_v24 = vpop.f32.mrb[23].mxu0  ;;  %v2064_v26 = vmul.f32 -1.442695, %v930_v23  ;;  %2475 = vpow2.f32 %v2063_v25 }
 0x930   :  { %2477 = vpow2.f32 %v2064_v26 }
 0x938   :  { %v2476_v27 = vpop.eup %2475 }
 0x939   :  { %v940_v29 = vadd.f32 1.0, %v2476_v27 }
 0x93a   :  { %v2478_v28 = vpop.eup %2477 }
 0x93b   :  { %v941_v30 = vadd.f32 1.0, %v2478_v28  ;;  %2479 = vrcp.f32 %v940_v29 }
 0x93d   :  { %2481 = vrcp.f32 %v941_v30 }
 0x945   :  { %v2480_v31 = vpop.eup %2479 }
 0x946   :  { %v946_v36 = vmul.f32 %v2480_v31, %v927_v21 }
 0x947   :  { %v2482_v32 = vpop.eup %2481 }
 0x948   :  { %v947_v37 = vmul.f32 %v2482_v32, %v930_v23 }
 0x99e   :  { %v951_v34 = vpop.permute.xlu0 %950 }
 0x99f   :  { %v956_v42 = vmul.f32 %v951_v34, %v946_v36 }
 0x9a0   :  { %v953_v40 = vpop.permute.xlu1 %952 }
 0x9a1   :  { %v957_v56 = vmul.f32 %v953_v40, %v947_v37 }
 0x9a3   :  { %v958_v59 = vpack.c.bf16 %v957_v56, %v956_v42 }
 0x9a5   :  { %2266 = vmatmul.mubr.msk.bf16.vlgmr.msra.gmra.mrb[20].mxu1 %vm991_vm7, %v958_v59 }
 0x9a6   :  { %2285 = vmatprep.mubr.msk.bf16.mxu1 %vm2710_vm1, %v2709_v7 }
 0xa78   :  { %v1029_v43 = vpop.f32.mrb[20].mxu1 }
 0xa79   :  { %v3132_v57 = vadd.f32 %v1029_v43, %v3083_v50  ;;  %v2267_v45 = vpop.f32.mrb[21].mxu1  ;;  %v2423_v50 = vld [vmem:[%s3367_s6 + $0x10] sm:$0xff]  }
 0xa7a   :  { %v1032_v46 = vpop.f32.mrb[22].mxu1  ;;  %2270 = vmatpush3.bf16.msra.mxu0 %v2423_v50 }
 0xa7b   :  { %v3135_v47 = vadd.f32 %v1032_v46, %v3086_v53  ;;  %v2268_v48 = vpop.f32.mrb[23].mxu1  ;;  %v1040_v49 = vmul.f32 %v3132_v57, %v3132_v57  ;;  %v2424_v53 = vld [vmem:[%s3367_s6 + $0x18] sm:$0xff]   ;;  %2271 = vmatprep.subr.bf16.mxu0 %v2709_v7 }
 0xa7d   :  { %v1042_v51 = vsel %vm141_vm0, %v1040_v49, 0.0  ;;  %v1041_v52 = vmul.f32 %v3135_v47, %v3135_v47 }
 0xa7e   :  { %1043 = vadd.xlane.f32.xlu1 %v1042_v51  ;;  %2272 = vmatpush3.bf16.msra.mxu0 %v2424_v53 }
 0xa7f   :  { %v1045_v54 = vsel %vm141_vm0, %v1041_v52, 0.0  ;;  %2277 = vmatprep.subr.bf16.mxu0 %v2709_v7 }
 0xa80   :  { %1046 = vadd.xlane.f32.xlu0 %v1045_v54 }
 0xb0b   :  { %v1044_v58 = vpop.xlane.xlu1 %1043 }
 0xb0c   :  { %v1048_v60 = vmul.f32 0.03125, %v1044_v58 }
 0xb0d   :  { %v1047_v61 = vpop.xlane.xlu0 %1046 }
 0xb0e   :  { %v1050_v62 = vadd.f32 1e-05, %v1048_v60  ;;  %v1049_v0 = vmul.f32 0.03125, %v1047_v61 }
 0xb10   :  { %2483 = vrsqrt.f32 %v1050_v62  ;;  %v1051_v1 = vadd.f32 1e-05, %v1049_v0 }
 0xb12   :  { %2485 = vrsqrt.f32 %v1051_v1 }
 0xb1a   :  { %v2484_v55 = vpop.eup %2483 }
 0xb1b   :  { %v1054_v63 = vmul.f32 %v2484_v55, %v3132_v57 }
 0xb1c   :  { %v2486_v2 = vpop.eup %2485 }
 0xb1d   :  { %v1055_v4 = vmul.f32 %v2486_v2, %v3135_v47  ;;  %v1062_v6 = vmul.f32 %v2071_v3, %v1054_v63 }
 0xb1f   :  { %v1063_v9 = vmul.f32 %v2071_v3, %v1055_v4 }
 0xb21   :  { %v1064_v10 = vpack.c.bf16 %v1063_v9, %v1062_v6 }
 0xb23   :  { %2274 = vmatmul.mubr.msk.bf16.vlgmr.msra.gmra.mrb[24].mxu0 %vm141_vm0, %v1064_v10 }
 0xb24   :  { %2279 = vmatprep.mubr.msk.bf16.mxu0 %vm2710_vm1, %v2709_v7 }
 0xbf6   :  { %v1119_v11 = vpop.f32.mrb[24].mxu0 }
 0xbf7   :  { %1136 = vrot.lane.b32.xlu1 %v1119_v11, %s2711_s2  ;;  %1130 = vrot.lane.b32.xlu0 %v1119_v11, %s2712_s22  ;;  %v2275_v12 = vpop.f32.mrb[25].mxu0  ;;  %v1126_v25 = vmul.f32 %v1119_v11, %v2948_v38 }
 0xbf8   :  { %v1122_v13 = vpop.f32.mrb[26].mxu0 }
 0xbf9   :  { %v2276_v14 = vpop.f32.mrb[27].mxu0  ;;  %v1127_v26 = vmul.f32 %v1122_v13, %v2953_v41 }
 0xbfb   :  { %1148 = vrot.lane.b32.xlu1 %v1119_v11, %s2713_s19  ;;  %1138 = vrot.lane.b32.xlu0 %v1122_v13, %s2711_s2 }
 0xbff   :  { %1150 = vrot.lane.b32.xlu0 %v1122_v13, %s2713_s19  ;;  %1132 = vrot.lane.b32.xlu1 %v1122_v13, %s2712_s22 }
 0xc03   :  { %1156 = vrot.lane.b32.xlu0 %v1122_v13, %s2708_s29  ;;  %1154 = vrot.lane.b32.xlu1 %v1119_v11, %s2708_s29 }
 0xc69   :  { %v1137_v15 = vpop.permute.xlu1 %1136  ;;  %v1131_v16 = vpop.permute.xlu0 %1130 }
 0xc6a   :  { %v1142_v19 = vsel %vm242_vm2, %v1131_v16, %v1137_v15 }
 0xc6b   :  { %v1144_v23 = vmul.f32 %v1142_v19, %v2942_v33 }
 0xc6d   :  { %v1149_v17 = vpop.permute.xlu1 %1148  ;;  %v1139_v18 = vpop.permute.xlu0 %1138  ;;  %v1146_v31 = vadd.f32 %v1144_v23, %v1126_v25 }
 0xc71   :  { %v1151_v20 = vpop.permute.xlu0 %1150  ;;  %v1133_v21 = vpop.permute.xlu1 %1132 }
 0xc72   :  { %v1143_v22 = vsel %vm242_vm2, %v1133_v21, %v1139_v18 }
 0xc73   :  { %v1145_v24 = vmul.f32 %v1143_v22, %v2945_v35 }
 0xc75   :  { %v1157_v27 = vpop.permute.xlu0 %1156  ;;  %v1155_v28 = vpop.permute.xlu1 %1154  ;;  %v1147_v32 = vadd.f32 %v1145_v24, %v1127_v26 }
 0xc76   :  { %v1161_v29 = vsel %vm261_vm3, %v1151_v20, %v1157_v27  ;;  %v1160_v30 = vsel %vm261_vm3, %v1149_v17, %v1155_v28 }
 0xc77   :  { %v1163_v34 = vmul.f32 %v1161_v29, %v2957_v44  ;;  %v1162_v36 = vmul.f32 %v1160_v30, %v2950_v39 }
 0xc79   :  { %v1165_v37 = vadd.f32 %v1163_v34, %v1147_v32  ;;  %v1164_v33 = vadd.f32 %v1162_v36, %v1146_v31 }
 0xc7b   :  { %v3177_v40 = vpack.c.bf16 %v1165_v37, %v1164_v33 }
 0xc7d   :  { %1170 = vrot.lane.b32.xlu0 %v3177_v40, %s2714_s23  ;;  %1168 = vrot.lane.b32.xlu1 %v3177_v40, %s2715_s24 }
 0xc81   :  { %1174 = vrot.lane.b32.xlu0 %v3177_v40, %s2716_s25  ;;  %1172 = vrot.lane.b32.xlu1 %v3177_v40, %s2717_s0 }
 0xcef   :  { %v3187_v35 = vpop.permute.xlu0 %1170  ;;  %v3189_v38 = vpop.permute.xlu1 %1168 }
 0xcf0   :  { %1272 = vrot.lane.b32.xlu0 %v3187_v35, %s2716_s25  ;;  %1223 = vrot.lane.b32.xlu1 %v3189_v38, %s2716_s25 }
 0xcf3   :  { %v1175_v39 = vpop.permute.xlu0 %1174  ;;  %v3195_v41 = vpop.permute.xlu1 %1172 }
 0xcf4   :  { %v1180_v44 = vsel %vm278_vm4, %v1175_v39, 0  ;;  %1321 = vrot.lane.b32.xlu1 %v3195_v41, %s2716_s25 }
 0xcf5   :  { %2278 = vmatpush3.bf16.xpose.msra.mxu0 %v1180_v44 }
 0xcf6   :  { %2289 = vmatprep.subr.bf16.mxu0 %v2709_v7 }
 0xcfc   :  { %2280 = vmatmul.mubr.msk.bf16.vlgmr.msra.gmra.mrb[28].mxu0 %vm278_vm4, %v3177_v40 }
 0xcfd   :  { %2291 = vmatprep.mubr.msk.bf16.mxu0 %vm2710_vm1, %v2709_v7 }
 0xd62   :  { %v1273_v42 = vpop.permute.xlu0 %1272  ;;  %v1224_v56 = vpop.permute.xlu1 %1223 }
 0xd63   :  { %v1278_v59 = vsel %vm278_vm4, %v1273_v42, 0  ;;  %v1229_v43 = vsel %vm278_vm4, %v1224_v56, 0 }
 0xd64   :  { %2284 = vmatpush3.bf16.xpose.msra.mxu1 %v1229_v43  ;;  %2290 = vmatpush3.bf16.xpose.msra.mxu0 %v1278_v59 }
 0xd65   :  { %2295 = vmatprep.subr.bf16.mxu1 %v2709_v7  ;;  %2301 = vmatprep.subr.bf16.mxu0 %v2709_v7 }
 0xd66   :  { %v1322_v45 = vpop.permute.xlu1 %1321 }
 0xd67   :  { %v1327_v46 = vsel %vm278_vm4, %v1322_v45, 0 }
 0xd6b   :  { %2286 = vmatmul.mubr.msk.bf16.vlgmr.msra.gmra.mrb[24].mxu1 %vm278_vm4, %v3189_v38  ;;  %2292 = vmatmul.mubr.msk.bf16.vlgmr.msra.gmra.mrb[32].mxu0 %vm278_vm4, %v3187_v35 }
 0xd6c   :  { %2296 = vmatpush3.bf16.xpose.msra.mxu1 %v1327_v46  ;;  %2297 = vmatprep.mubr.msk.bf16.mxu1 %vm2710_vm1, %v2709_v7 }
 0xd6d   :  { %2303 = vmatprep.mubr.msk.bf16.mxu0 %vm2710_vm1, %v2709_v7  ;;  %2307 = vmatprep.subr.bf16.mxu1 %v2709_v7 }
 0xd73   :  { %2298 = vmatmul.mubr.msk.bf16.vlgmr.msra.gmra.mrb[28].mxu1 %vm278_vm4, %v3195_v41 }
 0xd74   :  { %2309 = vmatprep.mubr.msk.bf16.mxu1 %vm2710_vm1, %v2709_v7 }
 0xdcf   :  { %v1216_v48 = vpop.f32.mrb[28].mxu0 }
 0xdd0   :  { %v1217_v49 = vadd.f32 %v1216_v48, %v3010_v5  ;;  %v2281_v51 = vpop.f32.mrb[29].mxu0 }
 0xdd1   :  { %v1219_v52 = vpop.f32.mrb[30].mxu0 }
 0xdd2   :  { %v1220_v54 = vadd.f32 %v1219_v52, %v3012_v8  ;;  %v2282_v50 = vpop.f32.mrb[31].mxu0  ;;  %v1370_v53 = vsel %vm473_vm5, %v1217_v49, -inf }
 0xdd3   :  { %1371 = vmax.xlane.f32.xlu0 %v1370_v53 }
 0xdd4   :  { %v1373_v58 = vsel %vm473_vm5, %v1220_v54, -inf }
 0xdd5   :  { %1374 = vmax.xlane.f32.xlu1 %v1373_v58 }
 0xe3e   :  { %v1265_v60 = vpop.f32.mrb[24].mxu1  ;;  %v1314_v61 = vpop.f32.mrb[32].mxu0 }
 0xe3f   :  { %v1266_v62 = vadd.f32 %v1265_v60, %v3010_v5  ;;  %v1315_v0 = vadd.f32 %v1314_v61, %v3010_v5  ;;  %v2287_v1 = vpop.f32.mrb[25].mxu1  ;;  %v2293_v55 = vpop.f32.mrb[33].mxu0 }
 0xe40   :  { %v1268_v63 = vpop.f32.mrb[26].mxu1  ;;  %v1317_v2 = vpop.f32.mrb[34].mxu0 }
 0xe41   :  { %v1269_v3 = vadd.f32 %v1268_v63, %v3012_v8  ;;  %v2288_v4 = vpop.f32.mrb[27].mxu1  ;;  %v2294_v6 = vpop.f32.mrb[35].mxu0  ;;  %v1382_v9 = vsel %vm473_vm5, %v1315_v0, -inf  ;;  %v1376_v10 = vsel %vm473_vm5, %v1266_v62, -inf  ;;  %v1318_v11 = vadd.f32 %v1317_v2, %v3012_v8 }
 0xe42   :  { %1383 = vmax.xlane.f32.xlu1 %v1382_v9  ;;  %1377 = vmax.xlane.f32.xlu0 %v1376_v10 }
 0xe43   :  { %v1379_v12 = vsel %vm473_vm5, %v1269_v3, -inf  ;;  %v1385_v19 = vsel %vm473_vm5, %v1318_v11, -inf }
 0xe46   :  { %1380 = vmax.xlane.f32.xlu0 %v1379_v12  ;;  %v1363_v13 = vpop.f32.mrb[28].mxu1 }
 0xe47   :  { %v1364_v14 = vadd.f32 %v1363_v13, %v3010_v5  ;;  %v2299_v15 = vpop.f32.mrb[29].mxu1 }
 0xe48   :  { %v1366_v16 = vpop.f32.mrb[30].mxu1 }
 0xe49   :  { %v1367_v17 = vadd.f32 %v1366_v16, %v3012_v8  ;;  %v2300_v18 = vpop.f32.mrb[31].mxu1  ;;  %v1388_v20 = vsel %vm473_vm5, %v1364_v14, -inf }
 0xe4a   :  { %1386 = vmax.xlane.f32.xlu0 %v1385_v19  ;;  %1389 = vmax.xlane.f32.xlu1 %v1388_v20 }
 0xe4b   :  { %v1391_v21 = vsel %vm473_vm5, %v1367_v17, -inf }
 0xe4e   :  { %1392 = vmax.xlane.f32.xlu0 %v1391_v21 }
 0xe5b   :  { %1462 = vrot.lane.b32.xlu1 %v3177_v40, %s2707_s4 }
 0xe60   :  { %v1372_v24 = vpop.xlane.xlu0 %1371 }
 0xe61   :  { %v1394_v25 = vsub.f32 %v1217_v49, %v1372_v24 }
 0xe62   :  { %v1375_v22 = vpop.xlane.xlu1 %1374 }
 0xe63   :  { %v1395_v23 = vsub.f32 %v1220_v54, %v1375_v22  ;;  %v1402_v8 = vmul.f32 1.442695, %v1394_v25 }
 0xe65   :  { %v1404_v5 = vmul.f32 1.442695, %v1395_v23 }
 0xe67   :  { %2487 = vpow2.f32 %v1404_v5 }
 0xe68   :  { %2489 = vpow2.f32 %v1402_v8 }
 0xe71   :  { %v2488_v26 = vpop.eup %2487 }
 0xe72   :  { %v1421_v27 = vsel %vm473_vm5, %v2488_v26, 0.0  ;;  %v2490_v28 = vpop.eup %2489 }
 0xe73   :  { %1422 = vadd.xlane.f32.xlu0 %v1421_v27  ;;  %v1418_v29 = vsel %vm473_vm5, %v2490_v28, 0.0 }
 0xe7f   :  { %1419 = vadd.xlane.f32.xlu1 %v1418_v29 }
 0xecf   :  { %v1384_v30 = vpop.xlane.xlu1 %1383  ;;  %v1378_v31 = vpop.xlane.xlu0 %1377 }
 0xed0   :  { %v1398_v32 = vsub.f32 %v1315_v0, %v1384_v30  ;;  %v1396_v34 = vsub.f32 %v1266_v62, %v1378_v31 }
 0xed2   :  { %v1406_v36 = vmul.f32 1.442695, %v1396_v34  ;;  %v1410_v37 = vmul.f32 1.442695, %v1398_v32 }
 0xed3   :  { %v1381_v33 = vpop.xlane.xlu0 %1380 }
 0xed4   :  { %v1397_v40 = vsub.f32 %v1269_v3, %v1381_v33  ;;  %2491 = vpow2.f32 %v1406_v36 }
 0xed5   :  { %2493 = vpow2.f32 %v1410_v37  ;;  %v2425_v37 = vld [vmem:[%s3368_s7 + $0x10] sm:$0xff]  }
 0xed6   :  { %v1408_v39 = vmul.f32 1.442695, %v1397_v40 }
 0xed7   :  { %v1387_v44 = vpop.xlane.xlu0 %1386  ;;  %v1390_v42 = vpop.xlane.xlu1 %1389 }
 0xed8   :  { %2495 = vpow2.f32 %v1408_v39  ;;  %v1399_v56 = vsub.f32 %v1318_v11, %v1387_v44  ;;  %v1400_v59 = vsub.f32 %v1364_v14, %v1390_v42  ;;  %v2426_v39 = vld [vmem:[%s3368_s7 + $0x18] sm:$0xff]  }
 0xeda   :  { %v1412_v43 = vmul.f32 1.442695, %v1399_v56  ;;  %v1414_v45 = vmul.f32 1.442695, %v1400_v59 }
 0xedb   :  { %v1463_v46 = vpop.permute.xlu1 %1462  ;;  %v1393_v48 = vpop.xlane.xlu0 %1392 }
 0xedc   :  { %2497 = vpow2.f32 %v1412_v43  ;;  %v1401_v49 = vsub.f32 %v1367_v17, %v1393_v48  ;;  %2302 = vmatpush3.bf16.msra.mxu0 %v1463_v46 }
 0xedd   :  { %2499 = vpow2.f32 %v1414_v45  ;;  %2313 = vmatprep.subr.bf16.mxu0 %v2709_v7 }
 0xede   :  { %v1416_v51 = vmul.f32 1.442695, %v1401_v49  ;;  %v2492_v52 = vpop.eup %2491 }
 0xedf   :  { %v1424_v54 = vsel %vm473_vm5, %v2492_v52, 0.0  ;;  %v2494_v50 = vpop.eup %2493 }
 0xee0   :  { %2501 = vpow2.f32 %v1416_v51  ;;  %1425 = vadd.xlane.f32.xlu1 %v1424_v54  ;;  %v1430_v60 = vsel %vm473_vm5, %v2494_v50, 0.0 }
 0xee2   :  { %v2496_v53 = vpop.eup %2495 }
 0xee3   :  { %v1427_v58 = vsel %vm473_vm5, %v2496_v53, 0.0 }
 0xee4   :  { %1428 = vadd.xlane.f32.xlu0 %v1427_v58  ;;  %1431 = vadd.xlane.f32.xlu1 %v1430_v60 }
 0xee6   :  { %v2498_v61 = vpop.eup %2497 }
 0xee7   :  { %v2500_v62 = vpop.eup %2499  ;;  %v1433_v0 = vsel %vm473_vm5, %v2498_v61, 0.0 }
 0xee8   :  { %v1436_v1 = vsel %vm473_vm5, %v2500_v62, 0.0  ;;  %1434 = vadd.xlane.f32.xlu0 %v1433_v0 }
 0xee9   :  { %1437 = vadd.xlane.f32.xlu1 %v1436_v1 }
 0xeea   :  { %v2502_v55 = vpop.eup %2501 }
 0xeeb   :  { %v1439_v63 = vsel %vm473_vm5, %v2502_v55, 0.0 }
 0xeec   :  { %1440 = vadd.xlane.f32.xlu0 %v1439_v63 }
 0xefa   :  { %1556 = vrot.lane.b32.xlu1 %v3187_v35, %s2707_s4 }
 0xefe   :  { %1603 = vrot.lane.b32.xlu1 %v3195_v41, %s2707_s4 }
 0xf00   :  { %v1423_v2 = vpop.xlane.xlu0 %1422 }
 0xf01   :  { %2503 = vrcp.f32 %v1423_v2 }
 0xf02   :  { %1509 = vrot.lane.b32.xlu0 %v3189_v38, %s2707_s4 }
 0xf0b   :  { %v2504_v4 = vpop.eup %2503 }
 0xf0c   :  { %v1420_v3 = vpop.xlane.xlu1 %1419  ;;  %v1451_v9 = vmul.f32 %v2504_v4, %v2488_v26 }
 0xf0d   :  { %2505 = vrcp.f32 %v1420_v3 }
 0xf17   :  { %v2506_v6 = vpop.eup %2505 }
 0xf18   :  { %v1450_v10 = vmul.f32 %v2506_v6, %v2490_v28 }
 0xf1a   :  { %v1458_v11 = vpack.c.bf16 %v1451_v9, %v1450_v10 }
 0xf1c   :  { %2304 = vmatmul.mubr.msk.bf16.vlgmr.msra.gmra.mrb[36].mxu0 %vm473_vm5, %v1458_v11 }
 0xf1d   :  { %2315 = vmatprep.mubr.msk.bf16.mxu0 %vm2710_vm1, %v2709_v7 }
 0xf6d   :  { %v1426_v35 = vpop.xlane.xlu1 %1425 }
 0xf6e   :  { %2507 = vrcp.f32 %v1426_v35 }
 0xf71   :  { %v1429_v41 = vpop.xlane.xlu0 %1428  ;;  %v1432_v12 = vpop.xlane.xlu1 %1431 }
 0xf72   :  { %2509 = vrcp.f32 %v1429_v41 }
 0xf73   :  { %2511 = vrcp.f32 %v1432_v12 }
 0xf75   :  { %v1435_v38 = vpop.xlane.xlu0 %1434 }
 0xf76   :  { %v1438_v13 = vpop.xlane.xlu1 %1437  ;;  %2513 = vrcp.f32 %v1435_v38 }
 0xf77   :  { %2515 = vrcp.f32 %v1438_v13 }
 0xf78   :  { %v2508_v15 = vpop.eup %2507 }
 0xf79   :  { %v1441_v14 = vpop.xlane.xlu0 %1440  ;;  %v1452_v18 = vmul.f32 %v2508_v15, %v2492_v52 }
 0xf7a   :  { %v1557_v16 = vpop.permute.xlu1 %1556  ;;  %2517 = vrcp.f32 %v1441_v14 }
 0xf7b   :  { %2314 = vmatpush3.bf16.msra.mxu0 %v1557_v16 }
 0xf7c   :  { %v2510_v17 = vpop.eup %2509  ;;  %2325 = vmatprep.subr.bf16.mxu0 %v2709_v7 }
 0xf7d   :  { %v1453_v19 = vmul.f32 %v2510_v17, %v2496_v53  ;;  %v1510_v20 = vpop.permute.xlu0 %1509  ;;  %v2512_v21 = vpop.eup %2511 }
 0xf7e   :  { %2308 = vmatpush3.bf16.msra.mxu1 %v1510_v20  ;;  %v1454_v5 = vmul.f32 %v2512_v21, %v2494_v50  ;;  %v1604_v25 = vpop.permute.xlu1 %1603 }
 0xf7f   :  { %v1459_v22 = vpack.c.bf16 %v1453_v19, %v1452_v18  ;;  %2319 = vmatprep.subr.bf16.mxu1 %v2709_v7 }
 0xf80   :  { %v2514_v23 = vpop.eup %2513 }
 0xf81   :  { %v1455_v24 = vmul.f32 %v2514_v23, %v2498_v61  ;;  %2310 = vmatmul.mubr.msk.bf16.vlgmr.msra.gmra.mrb[32].mxu1 %vm473_vm5, %v1459_v22  ;;  %v2516_v8 = vpop.eup %2515 }
 0xf82   :  { %2320 = vmatpush3.bf16.msra.mxu1 %v1604_v25  ;;  %2321 = vmatprep.mubr.msk.bf16.mxu1 %vm2710_vm1, %v2709_v7  ;;  %v1456_v28 = vmul.f32 %v2516_v8, %v2500_v62 }
 0xf83   :  { %v1460_v26 = vpack.c.bf16 %v1455_v24, %v1454_v5  ;;  %2333 = vmatprep.subr.bf16.mxu1 %v2709_v7 }
 0xf84   :  { %v2518_v27 = vpop.eup %2517 }
 0xf85   :  { %v1457_v29 = vmul.f32 %v2518_v27, %v2502_v55  ;;  %2316 = vmatmul.mubr.msk.bf16.vlgmr.msra.gmra.mrb[40].mxu0 %vm473_vm5, %v1460_v26  ;;  %v2095_v26 = vld [vmem:[%s3369_s8 + $0x1] ss:$0 sm:$0xff] }
 0xf86   :  { %2329 = vmatprep.mubr.msk.bf16.mxu0 %vm2710_vm1, %v2709_v7  ;;  %2326 = vmatpush3.bf16.msra.mxu0 %v2425_v37 }
 0xf87   :  { %v1461_v30 = vpack.c.bf16 %v1457_v29, %v1456_v28  ;;  %2327 = vmatprep.subr.bf16.mxu0 %v2709_v7 }
 0xf89   :  { %2322 = vmatmul.mubr.msk.bf16.vlgmr.msra.gmra.mrb[36].mxu1 %vm473_vm5, %v1461_v30 }
 0xf8a   :  { %2337 = vmatprep.mubr.msk.bf16.mxu1 %vm2710_vm1, %v2709_v7  ;;  %2328 = vmatpush3.bf16.msra.mxu0 %v2426_v39 }
 0xf8b   :  { %2341 = vmatprep.subr.bf16.mxu0 %v2709_v7 }
 0xfef   :  { %v1502_v31 = vpop.f32.mrb[36].mxu0 }
 0xff0   :  { %v2305_v32 = vpop.f32.mrb[37].mxu0 }
 0xff1   :  { %v1505_v34 = vpop.f32.mrb[38].mxu0  ;;  %v2430_v32 = vld [vmem:[%s3371_s10 + $0x28] sm:$0xff]  }
 0xff2   :  { %v2306_v36 = vpop.f32.mrb[39].mxu0 }
 0xff3   :  { %v2432_v36 = vld [vmem:[%s3371_s10 + $0x38] sm:$0xff]  }
0x1054   :  { %v1549_v33 = vpop.f32.mrb[32].mxu1 }
0x1055   :  { %v2311_v40 = vpop.f32.mrb[33].mxu1 }
0x1056   :  { %v1552_v44 = vpop.f32.mrb[34].mxu1 }
0x1057   :  { %v2398_v42 = vpack.i.bf16 %v1552_v44, %v1549_v33  ;;  %v2312_v56 = vpop.f32.mrb[35].mxu1 }
0x1058   :  { %v1596_v59 = vpop.f32.mrb[40].mxu0 }
0x1059   :  { %v2317_v43 = vpop.f32.mrb[41].mxu0  ;;  %2399 = vrot.lane.b32.xlu0 %v2398_v42, %s2702_s21 }
0x105a   :  { %v1599_v45 = vpop.f32.mrb[42].mxu0 }
0x105b   :  { %v2403_v46 = vpack.i.bf16 %v1599_v45, %v1596_v59  ;;  %v2318_v48 = vpop.f32.mrb[43].mxu0 }
0x105c   :  { %v1643_v49 = vpop.f32.mrb[36].mxu1 }
0x105d   :  { %2404 = vrot.lane.b32.xlu1 %v2403_v46, %s2718_s28  ;;  %v2323_v51 = vpop.f32.mrb[37].mxu1 }
0x105e   :  { %v1646_v52 = vpop.f32.mrb[38].mxu1 }
0x105f   :  { %v2408_v54 = vpack.i.bf16 %v1646_v52, %v1643_v49  ;;  %v2324_v50 = vpop.f32.mrb[39].mxu1 }
0x1061   :  { %2409 = vrot.lane.b32.xlu0 %v2408_v54, %s2719_s15 }
0x10cb   :  { %v2400_v53 = vpop.permute.xlu0 %2399 }
0x10cc   :  { %v2402_v60 = vunpack.i.h.bf16 %v2400_v53  ;;  %v2401_v61 = vunpack.i.l.bf16 %v2400_v53 }
0x10ce   :  { %v1675_v55 = vsel %vm278_vm4, %v1505_v34, %v2402_v60  ;;  %v1674_v63 = vsel %vm278_vm4, %v1502_v31, %v2401_v61  ;;  %v2429_v31 = vld [vmem:[%s3371_s10 + $0x20] sm:$0xff]   ;;  %v2431_v34 = vld [vmem:[%s3371_s10 + $0x30] sm:$0xff]  }
0x10cf   :  { %v2405_v58 = vpop.permute.xlu1 %2404 }
0x10d0   :  { %v2407_v62 = vunpack.i.h.bf16 %v2405_v58  ;;  %v2406_v0 = vunpack.i.l.bf16 %v2405_v58 }
0x10d2   :  { %v1676_v4 = vsel %vm473_vm5, %v1674_v63, %v2406_v0  ;;  %v1677_v6 = vsel %vm473_vm5, %v1675_v55, %v2407_v62 }
0x10d3   :  { %v2410_v1 = vpop.permute.xlu0 %2409 }
0x10d4   :  { %v2412_v2 = vunpack.i.h.bf16 %v2410_v1  ;;  %v2411_v3 = vunpack.i.l.bf16 %v2410_v1 }
0x10d6   :  { %v1679_v9 = vsel %vm782_vm6, %v1677_v6, %v2412_v2  ;;  %v1678_v10 = vsel %vm782_vm6, %v1676_v4, %v2411_v3  ;;  %v2433_v6 = vld [vmem:[#allocation11] sm:$0xff]  }
0x10d7   :  { %v1680_v11 = vpack.c.bf16 %v1679_v9, %v1678_v10  ;;  %v2434_v9 = vld [vmem:[#allocation11 + $0x8] sm:$0xff]  }
0x10d9   :  { %2330 = vmatmul.mubr.msk.bf16.vlgmr.msra.gmra.mrb[44].mxu0 %vm141_vm0, %v1680_v11 }
0x10da   :  { %2349 = vmatprep.mubr.msk.bf16.mxu0 %vm2710_vm1, %v2709_v7  ;;  %2342 = vmatpush3.bf16.msra.mxu0 %v2429_v31 }
0x10db   :  { %2343 = vmatprep.subr.bf16.mxu0 %v2709_v7 }
0x10de   :  { %2344 = vmatpush3.bf16.msra.mxu0 %v2430_v32 }
0x10df   :  { %2345 = vmatprep.subr.bf16.mxu0 %v2709_v7 }
0x10e2   :  { %2346 = vmatpush3.bf16.msra.mxu0 %v2431_v34 }
0x10e3   :  { %2347 = vmatprep.subr.bf16.mxu0 %v2709_v7 }
0x10e6   :  { %2348 = vmatpush3.bf16.msra.mxu0 %v2432_v36 }
0x11ac   :  { %v1735_v35 = vpop.f32.mrb[44].mxu0 }
0x11ad   :  { %v3292_v41 = vadd.f32 %v1735_v35, %v3132_v57  ;;  %v2331_v12 = vpop.f32.mrb[45].mxu0  ;;  %v2427_v57 = vld [vmem:[%s3370_s9 + $0x10] sm:$0xff]  }
0x11ae   :  { %v1738_v38 = vpop.f32.mrb[46].mxu0  ;;  %2334 = vmatpush3.bf16.msra.mxu1 %v2427_v57 }
0x11af   :  { %v3295_v13 = vadd.f32 %v1738_v38, %v3135_v47  ;;  %v2332_v14 = vpop.f32.mrb[47].mxu0  ;;  %v1746_v15 = vmul.f32 %v3292_v41, %v3292_v41  ;;  %v2428_v47 = vld [vmem:[%s3370_s9 + $0x18] sm:$0xff]   ;;  %2335 = vmatprep.subr.bf16.mxu1 %v2709_v7 }
0x11b1   :  { %v1748_v16 = vsel %vm141_vm0, %v1746_v15, 0.0  ;;  %v1747_v17 = vmul.f32 %v3295_v13, %v3295_v13 }
0x11b2   :  { %1749 = vadd.xlane.f32.xlu1 %v1748_v16  ;;  %2336 = vmatpush3.bf16.msra.mxu1 %v2428_v47  ;;  %v2118_v16 = vld [vmem:[%s3372_s11] ss:$0 sm:$0xff] }
0x11b3   :  { %v1751_v18 = vsel %vm141_vm0, %v1747_v17, 0.0  ;;  %2353 = vmatprep.subr.bf16.mxu1 %v2709_v7 }
0x11b4   :  { %1752 = vadd.xlane.f32.xlu0 %v1751_v18 }
0x123f   :  { %v1750_v19 = vpop.xlane.xlu1 %1749 }
0x1240   :  { %v1754_v20 = vmul.f32 0.03125, %v1750_v19 }
0x1241   :  { %v1753_v21 = vpop.xlane.xlu0 %1752 }
0x1242   :  { %v1756_v22 = vadd.f32 1e-05, %v1754_v20  ;;  %v1755_v23 = vmul.f32 0.03125, %v1753_v21 }
0x1244   :  { %2519 = vrsqrt.f32 %v1756_v22  ;;  %v1757_v5 = vadd.f32 1e-05, %v1755_v23 }
0x1246   :  { %2521 = vrsqrt.f32 %v1757_v5 }
0x124e   :  { %v2520_v24 = vpop.eup %2519 }
0x124f   :  { %v1760_v25 = vmul.f32 %v2520_v24, %v3292_v41 }
0x1250   :  { %v2522_v8 = vpop.eup %2521 }
0x1251   :  { %v1761_v27 = vmul.f32 %v2522_v8, %v3295_v13  ;;  %v1768_v28 = vmul.f32 %v2095_v26, %v1760_v25 }
0x1253   :  { %v1769_v29 = vmul.f32 %v2095_v26, %v1761_v27 }
0x1255   :  { %v1770_v30 = vpack.c.bf16 %v1769_v29, %v1768_v28 }
0x1257   :  { %2338 = vmatmul.mubr.msk.bf16.vlgmr.msra.gmra.mrb[40].mxu1 %vm141_vm0, %v1770_v30 }
0x1258   :  { %2357 = vmatprep.mubr.msk.bf16.mxu1 %vm2710_vm1, %v2709_v7  ;;  %2354 = vmatpush3.bf16.msra.mxu1 %v2433_v6 }
0x1259   :  { %2355 = vmatprep.subr.bf16.mxu1 %v2709_v7 }
0x125c   :  { %2356 = vmatpush3.bf16.msra.mxu1 %v2434_v9 }
0x132a   :  { %v1825_v37 = vpop.f32.mrb[40].mxu1 }
0x132b   :  { %1848 = vrot.lane.b32.xlu0 %v1825_v37, %s2707_s4  ;;  %v2339_v33 = vpop.f32.mrb[41].mxu1  ;;  %v2103_v44 = vmul.f32 -1.442695, %v1825_v37 }
0x132c   :  { %v1828_v40 = vpop.f32.mrb[42].mxu1 }
0x132d   :  { %1850 = vrot.lane.b32.xlu1 %v1828_v40, %s2707_s4  ;;  %v2340_v39 = vpop.f32.mrb[43].mxu1  ;;  %v2104_v42 = vmul.f32 -1.442695, %v1828_v40  ;;  %2523 = vpow2.f32 %v2103_v44 }
0x132f   :  { %2525 = vpow2.f32 %v2104_v42 }
0x1337   :  { %v2524_v56 = vpop.eup %2523 }
0x1338   :  { %v1838_v43 = vadd.f32 1.0, %v2524_v56 }
0x1339   :  { %v2526_v59 = vpop.eup %2525 }
0x133a   :  { %v1839_v45 = vadd.f32 1.0, %v2526_v59  ;;  %2527 = vrcp.f32 %v1838_v43 }
0x133c   :  { %2529 = vrcp.f32 %v1839_v45 }
0x1344   :  { %v2528_v46 = vpop.eup %2527 }
0x1345   :  { %v1844_v51 = vmul.f32 %v2528_v46, %v1825_v37 }
0x1346   :  { %v2530_v48 = vpop.eup %2529 }
0x1347   :  { %v1845_v52 = vmul.f32 %v2530_v48, %v1828_v40 }
0x139d   :  { %v1849_v49 = vpop.permute.xlu0 %1848 }
0x139e   :  { %v1854_v50 = vmul.f32 %v1849_v49, %v1844_v51 }
0x139f   :  { %v1851_v54 = vpop.permute.xlu1 %1850 }
0x13a0   :  { %v1855_v53 = vmul.f32 %v1851_v54, %v1845_v52 }
0x13a2   :  { %v1856_v58 = vpack.c.bf16 %v1855_v53, %v1854_v50 }
0x13a4   :  { %2350 = vmatmul.mubr.msk.bf16.vlgmr.msra.gmra.mrb[48].mxu0 %vm991_vm7, %v1856_v58 }
0x1477   :  { %v1927_v60 = vpop.f32.mrb[48].mxu0 }
0x1478   :  { %v1934_v61 = vadd.f32 %v1927_v60, %v3292_v41  ;;  %v2351_v62 = vpop.f32.mrb[49].mxu0 }
0x1479   :  { %v1930_v0 = vpop.f32.mrb[50].mxu0 }
0x147a   :  { %v1935_v1 = vadd.f32 %v1930_v0, %v3295_v13  ;;  %v2352_v55 = vpop.f32.mrb[51].mxu0  ;;  %v1937_v63 = vmul.f32 %v1934_v61, %v1934_v61 }
0x147c   :  { %v1939_v2 = vsel %vm141_vm0, %v1937_v63, 0.0  ;;  %v1938_v3 = vmul.f32 %v1935_v1, %v1935_v1 }
0x147d   :  { %1940 = vadd.xlane.f32.xlu1 %v1939_v2 }
0x147e   :  { %v1942_v4 = vsel %vm141_vm0, %v1938_v3, 0.0 }
0x147f   :  { %1943 = vadd.xlane.f32.xlu0 %v1942_v4 }
0x150a   :  { %v1941_v10 = vpop.xlane.xlu1 %1940 }
0x150b   :  { %v1945_v11 = vmul.f32 0.03125, %v1941_v10 }
0x150c   :  { %v1944_v35 = vpop.xlane.xlu0 %1943 }
0x150d   :  { %v1947_v41 = vadd.f32 1e-05, %v1945_v11  ;;  %v1946_v12 = vmul.f32 0.03125, %v1944_v35 }
0x150f   :  { %2531 = vrsqrt.f32 %v1947_v41  ;;  %v1948_v38 = vadd.f32 1e-05, %v1946_v12 }
0x1511   :  { %2533 = vrsqrt.f32 %v1948_v38 }
0x1519   :  { %v2532_v13 = vpop.eup %2531 }
0x151a   :  { %v1951_v14 = vmul.f32 %v2532_v13, %v1934_v61 }
0x151b   :  { %v2534_v15 = vpop.eup %2533 }
0x151c   :  { %v1952_v17 = vmul.f32 %v2534_v15, %v1935_v1  ;;  %v1959_v18 = vmul.f32 %v2118_v16, %v1951_v14 }
0x151e   :  { %v1960_v7 = vmul.f32 %v2118_v16, %v1952_v17 }
0x1520   :  { %v1961_v57 = vpack.c.bf16 %v1960_v7, %v1959_v18 }
0x1522   :  { %2358 = vmatmul.mubr.msk.bf16.vlgmr.msra.gmra.mrb[44].mxu1 %vm141_vm0, %v1961_v57 }
0x15f5   :  { %v2015_v47 = vpop.f32.mrb[44].mxu1 }
0x15f6   :  { %2022 = vst [vmem:[#allocation13] sm:$0xff] %v2015_v47  ;;  %v2359_v19 = vpop.f32.mrb[45].mxu1 }
0x15f7   :  { %v2018_v20 = vpop.f32.mrb[46].mxu1 }
0x15f8   :  { %2023 = vst [vmem:[#allocation13 + $0x8] sm:$0xff] %v2018_v20  ;;  %v2360_v21 = vpop.f32.mrb[47].mxu1 }
0x15f9   :  { %2678 = shalt.err (!%p2675_p10)
}
0x15fa   :  { %s2679_s27 = scalar_lea.hbm %s3374_s13, 256 }
0x15fb   :  { %p2680_p11 = scmp.ne.s32.totalorder %s3374_s13, %s2679_s27  ;;  %p2683_p12 = scmp.lt.u32.totalorder %s2679_s27, %s3374_s13 }
0x15fd   :  { %p2685_p13 = pnand %p2683_p12, %p2680_p11 }
0x15ff   :  { %2688 = shalt.err (!%p2685_p13)
}
0x1600   :  { %2035 = dma.vmem_to_hbm [thread:$0]  %s2030_s26, 256, %s3374_s13, [#allocation4], %s2701_s20, %s2701_s20, %s2702_s21  }
0x1601   :  { %2697 = dma.done.wait [#allocation4], 256  }
0x1602   :  { %2698 = vsyncadd [#allocation4], 4294967040 }
0x1603   :  { %2039 = vsyncpa [#allocation3], 1 }
0x1604   :  { %2040 = vsyncpa [#allocation6], 1 }
0x1605   :  { %2041 = vsyncpa [#allocation9], 1 }
0x1606   :  { %2042 = vsyncpa [#allocation12], 1 }
0x1607   :  { %2043 = vsyncpa [#allocation4], 1 }

</bundles_post_ra>
